<compile_context>
chip_gen: v5e
topology: v5e:2x2
jax: 0.10.0
libtpu: 0.0.40
codegen_flags: <defaults>
</compile_context>

<pallas_src>
import functools

import jax
import jax.numpy as jnp
from jax.experimental import pallas as pl
from jax.experimental.pallas import tpu as pltpu


# --------------------------------------------------------------------------
# Fused forward kernel
# --------------------------------------------------------------------------
def fused_gumbel_ssae_kernel(
        x_ref, tau_ref, g_ref, eps_ref,
        # classifier
        wc1, bc1, wc2, bc2, wc3, bc3,
        # encoder trunk (first layer row-split x|y) + packed mu/logvar heads
        we1x, we1y, be1, we2, be2, weh1, beh1, whd2, bhd2,
        # decoder (first layer takes cat(z, y) built in-register)
        wd1, bd1, wd2, bd2, wdm1, bdm1, wdm2, bdm2,
        # outputs
        xhat_ref, small_ref,
        *, nclasses, latent_dim, small_width):
    f32 = jnp.float32
    wdt = wc1.dtype                     # MXU operand dtype (bf16)

    def dense(a, w_ref, b_ref, relu=True):
        # activation already in MXU dtype; f32 accumulation, f32 bias/relu
        h = jnp.dot(a, w_ref[...], preferred_element_type=f32) + b_ref[...]
        return jnp.maximum(h, 0.0) if relu else h

    x = x_ref[...]                      # (TB, input_dim), already bf16

    # ---- classifier: Linear-ReLU-Linear-ReLU-Linear -> log_alpha ----------
    h = dense(x, wc1, bc1)
    h = dense(h.astype(wdt), wc2, bc2)
    log_alpha = dense(h.astype(wdt), wc3, bc3, relu=False)      # (TB, nc) f32

    # ---- y ~ RelaxedOneHotCategorical(tau, log_alpha) ----------------------
    # exact softmax divide (only `nclasses` lanes; approx recip buys nothing)
    inv_tau = 1.0 / tau_ref[0, 0]
    s = (log_alpha + g_ref[...]) * inv_tau
    s = s - jnp.max(s, axis=-1, keepdims=True)
    e = jnp.exp(s)
    y = e / jnp.sum(e, axis=-1, keepdims=True)
    y_bf = y.astype(wdt)                # cast once: reused by we1y and decoder

    # ---- encoder on cat(x, y): split-weight form (x half K=input_dim) ------
    h = jnp.maximum(
        jnp.dot(x, we1x[...], preferred_element_type=f32)
        + jnp.dot(y_bf, we1y[...], preferred_element_type=f32)
        + be1[...], 0.0)
    h = dense(h.astype(wdt), we2, be2)
    hh = dense(h.astype(wdt), weh1, beh1)                 # packed mu||logvar hidden
    ml = dense(hh.astype(wdt), whd2, bhd2, relu=False)    # block-diag -> mu||logvar
    z_mu = ml[:, :latent_dim]
    z_logvar = ml[:, latent_dim:]

    # ---- z ~ Normal(mu, exp(0.5 * logvar)) ---------------------------------
    std = jnp.exp(0.5 * z_logvar)
    z = z_mu + std * eps_ref[...]

    # ---- decoder: single K=(latent+nclasses) dot on in-register cat(z, y) --
    zy = jnp.concatenate([z, y], axis=-1).astype(wdt)
    h = dense(zy, wd1, bd1)
    h = dense(h.astype(wdt), wd2, bd2)
    h = dense(h.astype(wdt), wdm1, bdm1)
    xhat_ref[...] = dense(h.astype(wdt), wdm2, bdm2, relu=False)

    # ---- pack the narrow outputs into ONE lane-dense 128-wide slab ---------
    used = 2 * nclasses + 3 * latent_dim
    parts = [log_alpha, y, z_mu, std, z]
    if small_width > used:
        parts.append(jnp.zeros((x.shape[0], small_width - used), f32))
    small_ref[...] = jnp.concatenate(parts, axis=-1)


# --------------------------------------------------------------------------
# parameter init (PyTorch-Linear-style uniform), then one-time packing:
#   - split first encoder layer by input rows (x | y)
#   - pack mu/logvar head layer-1 side-by-side, layer-2 block-diagonally
#   - cast weights to bf16 (biases stay f32)
# --------------------------------------------------------------------------
def _init_linear(key, fan_in, fan_out):
    kw, kb = jax.random.split(key)
    bound = 1.0 / float(fan_in) ** 0.5
    w = jax.random.uniform(kw, (fan_in, fan_out), jnp.float32, -bound, bound)
    b = jax.random.uniform(kb, (1, fan_out), jnp.float32, -bound, bound)
    return w, b


def init_params(key, input_dim, nclasses, latent_dim, hidden_dim):
    ks = jax.random.split(key, 13)
    wdt = jnp.bfloat16

    wc1, bc1 = _init_linear(ks[0], input_dim, hidden_dim)
    wc2, bc2 = _init_linear(ks[1], hidden_dim, hidden_dim)
    wc3, bc3 = _init_linear(ks[2], hidden_dim, nclasses)

    we1, be1 = _init_linear(ks[3], input_dim + nclasses, hidden_dim)
    we2, be2 = _init_linear(ks[4], hidden_dim, hidden_dim)
    wm1, bm1 = _init_linear(ks[5], hidden_dim, hidden_dim)
    wm2, bm2 = _init_linear(ks[6], hidden_dim, latent_dim)
    wl1, bl1 = _init_linear(ks[7], hidden_dim, hidden_dim)
    wl2, bl2 = _init_linear(ks[8], hidden_dim, latent_dim)

    wd1, bd1 = _init_linear(ks[9], latent_dim + nclasses, hidden_dim)
    wd2, bd2 = _init_linear(ks[10], hidden_dim, hidden_dim)
    wdm1, bdm1 = _init_linear(ks[11], hidden_dim, hidden_dim)
    wdm2, bdm2 = _init_linear(ks[12], hidden_dim, input_dim)

    # mu/logvar head layer-1 packed side-by-side -> one (H, 2H) matmul
    weh1 = jnp.concatenate([wm1, wl1], axis=1)
    beh1 = jnp.concatenate([bm1, bl1], axis=1)
    # head layer-2 merged into one block-diagonal (2H, 2*latent) matmul
    whd2 = jnp.zeros((2 * hidden_dim, 2 * latent_dim), jnp.float32)
    whd2 = whd2.at[:hidden_dim, :latent_dim].set(wm2)
    whd2 = whd2.at[hidden_dim:, latent_dim:].set(wl2)
    bhd2 = jnp.concatenate([bm2, bl2], axis=1)

    return dict(
        # classifier
        wc1=wc1.astype(wdt), bc1=bc1, wc2=wc2.astype(wdt), bc2=bc2,
        wc3=wc3.astype(wdt), bc3=bc3,
        # encoder trunk: Linear(input_dim + nclasses, H) split by rows (x first)
        we1x=we1[:input_dim].astype(wdt), we1y=we1[input_dim:].astype(wdt),
        be1=be1, we2=we2.astype(wdt), be2=be2,
        weh1=weh1.astype(wdt), beh1=beh1, whd2=whd2.astype(wdt), bhd2=bhd2,
        # decoder: Linear(latent_dim + nclasses, H) kept whole (cat built in-kernel)
        wd1=wd1.astype(wdt), bd1=bd1, wd2=wd2.astype(wdt), bd2=bd2,
        wdm1=wdm1.astype(wdt), bdm1=bdm1, wdm2=wdm2.astype(wdt), bdm2=bdm2,
    )


_WEIGHT_ORDER = (
    "wc1", "bc1", "wc2", "bc2", "wc3", "bc3",
    "we1x", "we1y", "be1", "we2", "be2", "weh1", "beh1", "whd2", "bhd2",
    "wd1", "bd1", "wd2", "bd2", "wdm1", "bdm1", "wdm2", "bdm2",
)


# --------------------------------------------------------------------------
# GumbelSSAE forward (single fused pallas_call)
# --------------------------------------------------------------------------
def gumbel_ssae_forward(params, x_img, rng_key, tau=0.99, batch_tile=128):
    B = x_img.shape[0]
    # nn.Flatten(); x is only ever an MXU operand against bf16 weights -> bf16
    x = x_img.reshape(B, -1).astype(jnp.bfloat16)
    input_dim = x.shape[1]
    hidden_dim = params["wc1"].shape[1]
    nclasses = params["wc3"].shape[1]
    latent_dim = params["whd2"].shape[1] // 2

    tb = min(batch_tile, B)
    assert B % tb == 0, "batch must be divisible by the batch tile"
    nb = B // tb

    # Reparameterization noise drawn host-side (portable; identical math to
    # RelaxedOneHotCategorical.rsample / Normal.rsample).  Caller must advance
    # rng_key every step or the noise replays.
    k_g, k_e = jax.random.split(rng_key)
    g = jax.random.gumbel(k_g, (B, nclasses), jnp.float32)
    eps = jax.random.normal(k_e, (B, latent_dim), jnp.float32)
    tau_arr = jnp.full((1, 1), tau, jnp.float32)   # runtime scalar: anneal w/o recompile

    # lane-dense packed slab for the five narrow outputs
    small_used = 2 * nclasses + 3 * latent_dim
    small_width = max(128, ((small_used + 127) // 128) * 128)

    weights = tuple(params[k] for k in _WEIGHT_ORDER)

    def row_spec(width):
        # activation / output tiles: blocked over the batch axis only
        return pl.BlockSpec((tb, width), lambda i: (i, 0))

    def weight_spec(a):
        # full array, constant index_map -> DMA'd once, resident across grid.
        # (If hidden_dim is ever scaled up: add pipeline_mode=pl.Buffered(1)
        #  and a vmem_limit_bytes to keep VMEM growth at 1x the weights.)
        return pl.BlockSpec(a.shape, lambda i: (0, 0))

    out_shape = (
        jax.ShapeDtypeStruct((B, input_dim), jnp.float32),     # x_hat logits
        jax.ShapeDtypeStruct((B, small_width), jnp.float32),   # packed small outs
    )
    out_specs = (row_spec(input_dim), row_spec(small_width))

    # advisory cost estimate (13 GEMMs, exp for softmax + std)
    layer_kn = (
        (input_dim, hidden_dim), (hidden_dim, hidden_dim), (hidden_dim, nclasses),
        (input_dim, hidden_dim), (nclasses, hidden_dim), (hidden_dim, hidden_dim),
        (hidden_dim, 2 * hidden_dim), (2 * hidden_dim, 2 * latent_dim),
        (latent_dim + nclasses, hidden_dim), (hidden_dim, hidden_dim),
        (hidden_dim, hidden_dim), (hidden_dim, input_dim),
    )
    flops = 2 * B * sum(k * n for k, n in layer_kn)
    bytes_accessed = int(
        sum(int(w.size) * w.dtype.itemsize for w in weights)
        + x.size * x.dtype.itemsize + g.size * 4 + eps.size * 4 + 4
        + B * input_dim * 4 + B * small_width * 4)
    cost = pl.CostEstimate(flops=flops,
                           transcendentals=B * (nclasses + latent_dim),
                           bytes_accessed=bytes_accessed)

    kernel = functools.partial(fused_gumbel_ssae_kernel, nclasses=nclasses,
                               latent_dim=latent_dim, small_width=small_width)

    x_hat, small = pl.pallas_call(
        kernel,
        out_shape=out_shape,
        grid=(nb,),
        in_specs=[row_spec(input_dim), weight_spec(tau_arr),
                  row_spec(nclasses), row_spec(latent_dim)]
                 + [weight_spec(w) for w in weights],
        out_specs=out_specs,
        compiler_params=pltpu.CompilerParams(
            dimension_semantics=("parallel",)),
        cost_estimate=cost,
    )(x, tau_arr, g, eps, *weights)

    # split the packed slab (wrapper-side, pure layout)
    o = 0
    log_alpha = small[:, o:o + nclasses]; o += nclasses
    y_q = small[:, o:o + nclasses]; o += nclasses
    z_mu = small[:, o:o + latent_dim]; o += latent_dim
    z_std = small[:, o:o + latent_dim]; o += latent_dim
    z_q = small[:, o:o + latent_dim]

    # Distributions are returned as their parameters:
    #   z_q_dist -> Normal(z_mu, z_std); y_q_dist -> RelaxedOneHotCategorical(tau, log_alpha)
    # TODO(synk): torch.distributions objects themselves have no Pallas equivalent.
    return x_hat, z_q, y_q, (z_mu, z_std), (log_alpha, jnp.float32(tau))


# --------------------------------------------------------------------------
# main
# --------------------------------------------------------------------------
if __name__ == "__main__":
    # Small shapes consistent with the module's forward:
    #   image (B, C, H, W) = (16, 1, 16, 16) -> input_dim = 256
    B, C, H, W = 16, 1, 16, 16
    input_dim = C * H * W
    nclasses = 10
    latent_dim = 20
    hidden_dim = 128
    tau = 0.99

    root = jax.random.PRNGKey(0)
    k_params, k_data, k_noise = jax.random.split(root, 3)

    params = init_params(k_params, input_dim, nclasses, latent_dim, hidden_dim)
    x_img = jax.random.normal(k_data, (B, C, H, W), jnp.float32)

    x_hat, z_q, y_q, (z_mu, z_std), (log_alpha, tau_out) = gumbel_ssae_forward(
        params, x_img, k_noise, tau=tau, batch_tile=128)
    jax.block_until_ready((x_hat, z_q, y_q, z_mu, z_std, log_alpha))

    assert x_hat.shape == (B, input_dim)
    assert z_q.shape == (B, latent_dim)
    assert y_q.shape == (B, nclasses)
    assert log_alpha.shape == (B, nclasses)
    assert bool(jnp.all(jnp.isfinite(x_hat)))
    assert bool(jnp.all(z_std > 0.0))
    # y_q rows are a relaxed-one-hot sample -> must sum to 1 (exact softmax)
    assert bool(jnp.allclose(jnp.sum(y_q, axis=-1), 1.0, atol=1e-4))

    print("KERNEL_OK")
</pallas_src>

<mosaic_0001>
module attributes {stable_mosaic.version = 11 : i64} {
  func.func @fused_gumbel_ssae_kernel(%arg0: i32, %arg1: memref<16x256xbf16, #tpu.memory_space<vmem>>, %arg2: memref<1x1xf32, #tpu.memory_space<vmem>>, %arg3: memref<16x10xf32, #tpu.memory_space<vmem>>, %arg4: memref<16x20xf32, #tpu.memory_space<vmem>>, %arg5: memref<256x128xbf16, #tpu.memory_space<vmem>>, %arg6: memref<1x128xf32, #tpu.memory_space<vmem>>, %arg7: memref<128x128xbf16, #tpu.memory_space<vmem>>, %arg8: memref<1x128xf32, #tpu.memory_space<vmem>>, %arg9: memref<128x10xbf16, #tpu.memory_space<vmem>>, %arg10: memref<1x10xf32, #tpu.memory_space<vmem>>, %arg11: memref<256x128xbf16, #tpu.memory_space<vmem>>, %arg12: memref<10x128xbf16, #tpu.memory_space<vmem>>, %arg13: memref<1x128xf32, #tpu.memory_space<vmem>>, %arg14: memref<128x128xbf16, #tpu.memory_space<vmem>>, %arg15: memref<1x128xf32, #tpu.memory_space<vmem>>, %arg16: memref<128x256xbf16, #tpu.memory_space<vmem>>, %arg17: memref<1x256xf32, #tpu.memory_space<vmem>>, %arg18: memref<256x40xbf16, #tpu.memory_space<vmem>>, %arg19: memref<1x40xf32, #tpu.memory_space<vmem>>, %arg20: memref<30x128xbf16, #tpu.memory_space<vmem>>, %arg21: memref<1x128xf32, #tpu.memory_space<vmem>>, %arg22: memref<128x128xbf16, #tpu.memory_space<vmem>>, %arg23: memref<1x128xf32, #tpu.memory_space<vmem>>, %arg24: memref<128x128xbf16, #tpu.memory_space<vmem>>, %arg25: memref<1x128xf32, #tpu.memory_space<vmem>>, %arg26: memref<128x256xbf16, #tpu.memory_space<vmem>>, %arg27: memref<1x256xf32, #tpu.memory_space<vmem>>, %arg28: memref<16x256xf32, #tpu.memory_space<vmem>>, %arg29: memref<16x128xf32, #tpu.memory_space<vmem>>) attributes {dimension_semantics = [#tpu.dimension_semantics<parallel>], iteration_bounds = array<i64: 1>, scalar_prefetch = 0 : i64, scratch_operands = 0 : i64, tpu.core_type = #tpu.core_type<tc>, window_params = [{transform_indices = @transform_0, window_bounds = array<i64: 16, 256>}, {pipeline_mode = #tpu.pipeline_mode<synchronous>, transform_indices = @transform_1, window_bounds = array<i64: 1, 1>}, {transform_indices = @transform_2, window_bounds = array<i64: 16, 10>}, {transform_indices = @transform_3, window_bounds = array<i64: 16, 20>}, {pipeline_mode = #tpu.pipeline_mode<synchronous>, transform_indices = @transform_4, window_bounds = array<i64: 256, 128>}, {pipeline_mode = #tpu.pipeline_mode<synchronous>, transform_indices = @transform_5, window_bounds = array<i64: 1, 128>}, {pipeline_mode = #tpu.pipeline_mode<synchronous>, transform_indices = @transform_6, window_bounds = array<i64: 128, 128>}, {pipeline_mode = #tpu.pipeline_mode<synchronous>, transform_indices = @transform_7, window_bounds = array<i64: 1, 128>}, {pipeline_mode = #tpu.pipeline_mode<synchronous>, transform_indices = @transform_8, window_bounds = array<i64: 128, 10>}, {pipeline_mode = #tpu.pipeline_mode<synchronous>, transform_indices = @transform_9, window_bounds = array<i64: 1, 10>}, {pipeline_mode = #tpu.pipeline_mode<synchronous>, transform_indices = @transform_10, window_bounds = array<i64: 256, 128>}, {pipeline_mode = #tpu.pipeline_mode<synchronous>, transform_indices = @transform_11, window_bounds = array<i64: 10, 128>}, {pipeline_mode = #tpu.pipeline_mode<synchronous>, transform_indices = @transform_12, window_bounds = array<i64: 1, 128>}, {pipeline_mode = #tpu.pipeline_mode<synchronous>, transform_indices = @transform_13, window_bounds = array<i64: 128, 128>}, {pipeline_mode = #tpu.pipeline_mode<synchronous>, transform_indices = @transform_14, window_bounds = array<i64: 1, 128>}, {pipeline_mode = #tpu.pipeline_mode<synchronous>, transform_indices = @transform_15, window_bounds = array<i64: 128, 256>}, {pipeline_mode = #tpu.pipeline_mode<synchronous>, transform_indices = @transform_16, window_bounds = array<i64: 1, 256>}, {pipeline_mode = #tpu.pipeline_mode<synchronous>, transform_indices = @transform_17, window_bounds = array<i64: 256, 40>}, {pipeline_mode = #tpu.pipeline_mode<synchronous>, transform_indices = @transform_18, window_bounds = array<i64: 1, 40>}, {pipeline_mode = #tpu.pipeline_mode<synchronous>, transform_indices = @transform_19, window_bounds = array<i64: 30, 128>}, {pipeline_mode = #tpu.pipeline_mode<synchronous>, transform_indices = @transform_20, window_bounds = array<i64: 1, 128>}, {pipeline_mode = #tpu.pipeline_mode<synchronous>, transform_indices = @transform_21, window_bounds = array<i64: 128, 128>}, {pipeline_mode = #tpu.pipeline_mode<synchronous>, transform_indices = @transform_22, window_bounds = array<i64: 1, 128>}, {pipeline_mode = #tpu.pipeline_mode<synchronous>, transform_indices = @transform_23, window_bounds = array<i64: 128, 128>}, {pipeline_mode = #tpu.pipeline_mode<synchronous>, transform_indices = @transform_24, window_bounds = array<i64: 1, 128>}, {pipeline_mode = #tpu.pipeline_mode<synchronous>, transform_indices = @transform_25, window_bounds = array<i64: 128, 256>}, {pipeline_mode = #tpu.pipeline_mode<synchronous>, transform_indices = @transform_26, window_bounds = array<i64: 1, 256>}, {transform_indices = @transform_27, window_bounds = array<i64: 16, 256>}, {transform_indices = @transform_28, window_bounds = array<i64: 16, 128>}]} {
    %c0 = arith.constant 0 : index
    %c0_0 = arith.constant 0 : index
    %0 = vector.load %arg1[%c0, %c0_0] : memref<16x256xbf16, #tpu.memory_space<vmem>>, vector<16x256xbf16>
    %c0_1 = arith.constant 0 : index
    %c0_2 = arith.constant 0 : index
    %1 = vector.load %arg5[%c0_1, %c0_2] : memref<256x128xbf16, #tpu.memory_space<vmem>>, vector<256x128xbf16>
    %cst = arith.constant dense<0.000000e+00> : vector<16x128xf32>
    %2 = tpu.matmul %0, %1, %cst {dimension_numbers = #tpu.dot_dimension_numbers<[1], [0], [0], [1], [0, 0, 1, 1], [], []>} : vector<16x256xbf16>, vector<256x128xbf16>, vector<16x128xf32> -> vector<16x128xf32>
    %c0_3 = arith.constant 0 : index
    %c0_4 = arith.constant 0 : index
    %3 = vector.load %arg6[%c0_3, %c0_4] : memref<1x128xf32, #tpu.memory_space<vmem>>, vector<1x128xf32>
    %4 = vector.broadcast %3 : vector<1x128xf32> to vector<16x128xf32>
    %5 = arith.addf %2, %4 : vector<16x128xf32>
    %cst_5 = arith.constant 0.000000e+00 : f32
    %6 = vector.broadcast %cst_5 : f32 to vector<16x128xf32>
    %7 = arith.maximumf %5, %6 : vector<16x128xf32>
    %8 = arith.truncf %7 : vector<16x128xf32> to vector<16x128xbf16>
    %c0_6 = arith.constant 0 : index
    %c0_7 = arith.constant 0 : index
    %9 = vector.load %arg7[%c0_6, %c0_7] : memref<128x128xbf16, #tpu.memory_space<vmem>>, vector<128x128xbf16>
    %cst_8 = arith.constant dense<0.000000e+00> : vector<16x128xf32>
    %10 = tpu.matmul %8, %9, %cst_8 {dimension_numbers = #tpu.dot_dimension_numbers<[1], [0], [0], [1], [0, 0, 1, 1], [], []>} : vector<16x128xbf16>, vector<128x128xbf16>, vector<16x128xf32> -> vector<16x128xf32>
    %c0_9 = arith.constant 0 : index
    %c0_10 = arith.constant 0 : index
    %11 = vector.load %arg8[%c0_9, %c0_10] : memref<1x128xf32, #tpu.memory_space<vmem>>, vector<1x128xf32>
    %12 = vector.broadcast %11 : vector<1x128xf32> to vector<16x128xf32>
    %13 = arith.addf %10, %12 : vector<16x128xf32>
    %cst_11 = arith.constant 0.000000e+00 : f32
    %14 = vector.broadcast %cst_11 : f32 to vector<16x128xf32>
    %15 = arith.maximumf %13, %14 : vector<16x128xf32>
    %16 = arith.truncf %15 : vector<16x128xf32> to vector<16x128xbf16>
    %c0_12 = arith.constant 0 : index
    %c0_13 = arith.constant 0 : index
    %17 = vector.load %arg9[%c0_12, %c0_13] : memref<128x10xbf16, #tpu.memory_space<vmem>>, vector<128x10xbf16>
    %cst_14 = arith.constant dense<0.000000e+00> : vector<16x10xf32>
    %18 = tpu.matmul %16, %17, %cst_14 {dimension_numbers = #tpu.dot_dimension_numbers<[1], [0], [0], [1], [0, 0, 1, 1], [], []>} : vector<16x128xbf16>, vector<128x10xbf16>, vector<16x10xf32> -> vector<16x10xf32>
    %c0_15 = arith.constant 0 : index
    %c0_16 = arith.constant 0 : index
    %19 = vector.load %arg10[%c0_15, %c0_16] : memref<1x10xf32, #tpu.memory_space<vmem>>, vector<1x10xf32>
    %20 = vector.broadcast %19 : vector<1x10xf32> to vector<16x10xf32>
    %21 = arith.addf %18, %20 : vector<16x10xf32>
    %c0_17 = arith.constant 0 : index
    %c0_18 = arith.constant 0 : index
    %22 = vector.load %arg2[%c0_17, %c0_18] : memref<1x1xf32, #tpu.memory_space<vmem>>, vector<1x1xf32>
    %23 = vector.extract %22[0, 0] : f32 from vector<1x1xf32>
    %cst_19 = arith.constant 1.000000e+00 : f32
    %24 = arith.divf %cst_19, %23 : f32
    %c0_20 = arith.constant 0 : index
    %c0_21 = arith.constant 0 : index
    %25 = vector.load %arg3[%c0_20, %c0_21] : memref<16x10xf32, #tpu.memory_space<vmem>>, vector<16x10xf32>
    %26 = arith.addf %21, %25 : vector<16x10xf32>
    %27 = vector.broadcast %24 : f32 to vector<16x10xf32>
    %28 = arith.mulf %26, %27 : vector<16x10xf32>
    %cst_22 = arith.constant dense<0xFF800000> : vector<16xf32>
    %29 = vector.multi_reduction <maximumf>, %28, %cst_22 [1] : vector<16x10xf32> to vector<16xf32>
    %30 = vector.shape_cast %29 : vector<16xf32> to vector<16x1xf32>
    %31 = vector.broadcast %30 : vector<16x1xf32> to vector<16x10xf32>
    %32 = arith.subf %28, %31 : vector<16x10xf32>
    %33 = math.exp %32 : vector<16x10xf32>
    %cst_23 = arith.constant dense<0.000000e+00> : vector<16xf32>
    %34 = vector.multi_reduction <add>, %33, %cst_23 [1] : vector<16x10xf32> to vector<16xf32>
    %35 = vector.shape_cast %34 : vector<16xf32> to vector<16x1xf32>
    %36 = vector.broadcast %35 : vector<16x1xf32> to vector<16x10xf32>
    %37 = arith.divf %33, %36 : vector<16x10xf32>
    %38 = arith.truncf %37 : vector<16x10xf32> to vector<16x10xbf16>
    %c0_24 = arith.constant 0 : index
    %c0_25 = arith.constant 0 : index
    %39 = vector.load %arg11[%c0_24, %c0_25] : memref<256x128xbf16, #tpu.memory_space<vmem>>, vector<256x128xbf16>
    %cst_26 = arith.constant dense<0.000000e+00> : vector<16x128xf32>
    %40 = tpu.matmul %0, %39, %cst_26 {dimension_numbers = #tpu.dot_dimension_numbers<[1], [0], [0], [1], [0, 0, 1, 1], [], []>} : vector<16x256xbf16>, vector<256x128xbf16>, vector<16x128xf32> -> vector<16x128xf32>
    %c0_27 = arith.constant 0 : index
    %c0_28 = arith.constant 0 : index
    %41 = vector.load %arg12[%c0_27, %c0_28] : memref<10x128xbf16, #tpu.memory_space<vmem>>, vector<10x128xbf16>
    %cst_29 = arith.constant dense<0.000000e+00> : vector<16x128xf32>
    %42 = tpu.matmul %38, %41, %cst_29 {dimension_numbers = #tpu.dot_dimension_numbers<[1], [0], [0], [1], [0, 0, 1, 1], [], []>} : vector<16x10xbf16>, vector<10x128xbf16>, vector<16x128xf32> -> vector<16x128xf32>
    %43 = arith.addf %40, %42 : vector<16x128xf32>
    %c0_30 = arith.constant 0 : index
    %c0_31 = arith.constant 0 : index
    %44 = vector.load %arg13[%c0_30, %c0_31] : memref<1x128xf32, #tpu.memory_space<vmem>>, vector<1x128xf32>
    %45 = vector.broadcast %44 : vector<1x128xf32> to vector<16x128xf32>
    %46 = arith.addf %43, %45 : vector<16x128xf32>
    %cst_32 = arith.constant 0.000000e+00 : f32
    %47 = vector.broadcast %cst_32 : f32 to vector<16x128xf32>
    %48 = arith.maximumf %46, %47 : vector<16x128xf32>
    %49 = arith.truncf %48 : vector<16x128xf32> to vector<16x128xbf16>
    %c0_33 = arith.constant 0 : index
    %c0_34 = arith.constant 0 : index
    %50 = vector.load %arg14[%c0_33, %c0_34] : memref<128x128xbf16, #tpu.memory_space<vmem>>, vector<128x128xbf16>
    %cst_35 = arith.constant dense<0.000000e+00> : vector<16x128xf32>
    %51 = tpu.matmul %49, %50, %cst_35 {dimension_numbers = #tpu.dot_dimension_numbers<[1], [0], [0], [1], [0, 0, 1, 1], [], []>} : vector<16x128xbf16>, vector<128x128xbf16>, vector<16x128xf32> -> vector<16x128xf32>
    %c0_36 = arith.constant 0 : index
    %c0_37 = arith.constant 0 : index
    %52 = vector.load %arg15[%c0_36, %c0_37] : memref<1x128xf32, #tpu.memory_space<vmem>>, vector<1x128xf32>
    %53 = vector.broadcast %52 : vector<1x128xf32> to vector<16x128xf32>
    %54 = arith.addf %51, %53 : vector<16x128xf32>
    %cst_38 = arith.constant 0.000000e+00 : f32
    %55 = vector.broadcast %cst_38 : f32 to vector<16x128xf32>
    %56 = arith.maximumf %54, %55 : vector<16x128xf32>
    %57 = arith.truncf %56 : vector<16x128xf32> to vector<16x128xbf16>
    %c0_39 = arith.constant 0 : index
    %c0_40 = arith.constant 0 : index
    %58 = vector.load %arg16[%c0_39, %c0_40] : memref<128x256xbf16, #tpu.memory_space<vmem>>, vector<128x256xbf16>
    %cst_41 = arith.constant dense<0.000000e+00> : vector<16x256xf32>
    %59 = tpu.matmul %57, %58, %cst_41 {dimension_numbers = #tpu.dot_dimension_numbers<[1], [0], [0], [1], [0, 0, 1, 1], [], []>} : vector<16x128xbf16>, vector<128x256xbf16>, vector<16x256xf32> -> vector<16x256xf32>
    %c0_42 = arith.constant 0 : index
    %c0_43 = arith.constant 0 : index
    %60 = vector.load %arg17[%c0_42, %c0_43] : memref<1x256xf32, #tpu.memory_space<vmem>>, vector<1x256xf32>
    %61 = vector.broadcast %60 : vector<1x256xf32> to vector<16x256xf32>
    %62 = arith.addf %59, %61 : vector<16x256xf32>
    %cst_44 = arith.constant 0.000000e+00 : f32
    %63 = vector.broadcast %cst_44 : f32 to vector<16x256xf32>
    %64 = arith.maximumf %62, %63 : vector<16x256xf32>
    %65 = arith.truncf %64 : vector<16x256xf32> to vector<16x256xbf16>
    %c0_45 = arith.constant 0 : index
    %c0_46 = arith.constant 0 : index
    %66 = vector.load %arg18[%c0_45, %c0_46] : memref<256x40xbf16, #tpu.memory_space<vmem>>, vector<256x40xbf16>
    %cst_47 = arith.constant dense<0.000000e+00> : vector<16x40xf32>
    %67 = tpu.matmul %65, %66, %cst_47 {dimension_numbers = #tpu.dot_dimension_numbers<[1], [0], [0], [1], [0, 0, 1, 1], [], []>} : vector<16x256xbf16>, vector<256x40xbf16>, vector<16x40xf32> -> vector<16x40xf32>
    %c0_48 = arith.constant 0 : index
    %c0_49 = arith.constant 0 : index
    %68 = vector.load %arg19[%c0_48, %c0_49] : memref<1x40xf32, #tpu.memory_space<vmem>>, vector<1x40xf32>
    %69 = vector.broadcast %68 : vector<1x40xf32> to vector<16x40xf32>
    %70 = arith.addf %67, %69 : vector<16x40xf32>
    %71 = vector.extract_strided_slice %70 {offsets = [0, 0], sizes = [16, 20], strides = [1, 1]} : vector<16x40xf32> to vector<16x20xf32>
    %72 = vector.extract_strided_slice %70 {offsets = [0, 20], sizes = [16, 20], strides = [1, 1]} : vector<16x40xf32> to vector<16x20xf32>
    %cst_50 = arith.constant 5.000000e-01 : f32
    %73 = vector.broadcast %cst_50 : f32 to vector<16x20xf32>
    %74 = arith.mulf %73, %72 : vector<16x20xf32>
    %75 = math.exp %74 : vector<16x20xf32>
    %c0_51 = arith.constant 0 : index
    %c0_52 = arith.constant 0 : index
    %76 = vector.load %arg4[%c0_51, %c0_52] : memref<16x20xf32, #tpu.memory_space<vmem>>, vector<16x20xf32>
    %77 = arith.mulf %75, %76 : vector<16x20xf32>
    %78 = arith.addf %71, %77 : vector<16x20xf32>
    %79 = tpu.concatenate %78, %37 in 1 : vector<16x20xf32>, vector<16x10xf32> -> vector<16x30xf32>
    %80 = arith.truncf %79 : vector<16x30xf32> to vector<16x30xbf16>
    %c0_53 = arith.constant 0 : index
    %c0_54 = arith.constant 0 : index
    %81 = vector.load %arg20[%c0_53, %c0_54] : memref<30x128xbf16, #tpu.memory_space<vmem>>, vector<30x128xbf16>
    %cst_55 = arith.constant dense<0.000000e+00> : vector<16x128xf32>
    %82 = tpu.matmul %80, %81, %cst_55 {dimension_numbers = #tpu.dot_dimension_numbers<[1], [0], [0], [1], [0, 0, 1, 1], [], []>} : vector<16x30xbf16>, vector<30x128xbf16>, vector<16x128xf32> -> vector<16x128xf32>
    %c0_56 = arith.constant 0 : index
    %c0_57 = arith.constant 0 : index
    %83 = vector.load %arg21[%c0_56, %c0_57] : memref<1x128xf32, #tpu.memory_space<vmem>>, vector<1x128xf32>
    %84 = vector.broadcast %83 : vector<1x128xf32> to vector<16x128xf32>
    %85 = arith.addf %82, %84 : vector<16x128xf32>
    %cst_58 = arith.constant 0.000000e+00 : f32
    %86 = vector.broadcast %cst_58 : f32 to vector<16x128xf32>
    %87 = arith.maximumf %85, %86 : vector<16x128xf32>
    %88 = arith.truncf %87 : vector<16x128xf32> to vector<16x128xbf16>
    %c0_59 = arith.constant 0 : index
    %c0_60 = arith.constant 0 : index
    %89 = vector.load %arg22[%c0_59, %c0_60] : memref<128x128xbf16, #tpu.memory_space<vmem>>, vector<128x128xbf16>
    %cst_61 = arith.constant dense<0.000000e+00> : vector<16x128xf32>
    %90 = tpu.matmul %88, %89, %cst_61 {dimension_numbers = #tpu.dot_dimension_numbers<[1], [0], [0], [1], [0, 0, 1, 1], [], []>} : vector<16x128xbf16>, vector<128x128xbf16>, vector<16x128xf32> -> vector<16x128xf32>
    %c0_62 = arith.constant 0 : index
    %c0_63 = arith.constant 0 : index
    %91 = vector.load %arg23[%c0_62, %c0_63] : memref<1x128xf32, #tpu.memory_space<vmem>>, vector<1x128xf32>
    %92 = vector.broadcast %91 : vector<1x128xf32> to vector<16x128xf32>
    %93 = arith.addf %90, %92 : vector<16x128xf32>
    %cst_64 = arith.constant 0.000000e+00 : f32
    %94 = vector.broadcast %cst_64 : f32 to vector<16x128xf32>
    %95 = arith.maximumf %93, %94 : vector<16x128xf32>
    %96 = arith.truncf %95 : vector<16x128xf32> to vector<16x128xbf16>
    %c0_65 = arith.constant 0 : index
    %c0_66 = arith.constant 0 : index
    %97 = vector.load %arg24[%c0_65, %c0_66] : memref<128x128xbf16, #tpu.memory_space<vmem>>, vector<128x128xbf16>
    %cst_67 = arith.constant dense<0.000000e+00> : vector<16x128xf32>
    %98 = tpu.matmul %96, %97, %cst_67 {dimension_numbers = #tpu.dot_dimension_numbers<[1], [0], [0], [1], [0, 0, 1, 1], [], []>} : vector<16x128xbf16>, vector<128x128xbf16>, vector<16x128xf32> -> vector<16x128xf32>
    %c0_68 = arith.constant 0 : index
    %c0_69 = arith.constant 0 : index
    %99 = vector.load %arg25[%c0_68, %c0_69] : memref<1x128xf32, #tpu.memory_space<vmem>>, vector<1x128xf32>
    %100 = vector.broadcast %99 : vector<1x128xf32> to vector<16x128xf32>
    %101 = arith.addf %98, %100 : vector<16x128xf32>
    %cst_70 = arith.constant 0.000000e+00 : f32
    %102 = vector.broadcast %cst_70 : f32 to vector<16x128xf32>
    %103 = arith.maximumf %101, %102 : vector<16x128xf32>
    %104 = arith.truncf %103 : vector<16x128xf32> to vector<16x128xbf16>
    %c0_71 = arith.constant 0 : index
    %c0_72 = arith.constant 0 : index
    %105 = vector.load %arg26[%c0_71, %c0_72] : memref<128x256xbf16, #tpu.memory_space<vmem>>, vector<128x256xbf16>
    %cst_73 = arith.constant dense<0.000000e+00> : vector<16x256xf32>
    %106 = tpu.matmul %104, %105, %cst_73 {dimension_numbers = #tpu.dot_dimension_numbers<[1], [0], [0], [1], [0, 0, 1, 1], [], []>} : vector<16x128xbf16>, vector<128x256xbf16>, vector<16x256xf32> -> vector<16x256xf32>
    %c0_74 = arith.constant 0 : index
    %c0_75 = arith.constant 0 : index
    %107 = vector.load %arg27[%c0_74, %c0_75] : memref<1x256xf32, #tpu.memory_space<vmem>>, vector<1x256xf32>
    %108 = vector.broadcast %107 : vector<1x256xf32> to vector<16x256xf32>
    %109 = arith.addf %106, %108 : vector<16x256xf32>
    %c0_76 = arith.constant 0 : index
    %c0_77 = arith.constant 0 : index
    %110 = vector.load %arg28[%c0_76, %c0_77] : memref<16x256xf32, #tpu.memory_space<vmem>>, vector<16x256xf32>
    tpu.vector_store %arg28[%c0_76, %c0_77], %109 {strides = array<i32>} : memref<16x256xf32, #tpu.memory_space<vmem>>, vector<16x256xf32>,
    %cst_78 = arith.constant 0.000000e+00 : f32
    %111 = vector.broadcast %cst_78 : f32 to vector<16x48xf32>
    %112 = tpu.concatenate %21, %37, %71, %75, %78, %111 in 1 : vector<16x10xf32>, vector<16x10xf32>, vector<16x20xf32>, vector<16x20xf32>, vector<16x20xf32>, vector<16x48xf32> -> vector<16x128xf32>
    %c0_79 = arith.constant 0 : index
    %c0_80 = arith.constant 0 : index
    %113 = vector.load %arg29[%c0_79, %c0_80] : memref<16x128xf32, #tpu.memory_space<vmem>>, vector<16x128xf32>
    tpu.vector_store %arg29[%c0_79, %c0_80], %112 {strides = array<i32>} : memref<16x128xf32, #tpu.memory_space<vmem>>, vector<16x128xf32>,
    return
  }
  func.func @transform_0(%arg0: i32) -> (i32, i32) {
    %c0_i32 = arith.constant 0 : i32
    %c0_i32_0 = arith.constant 0 : i32
    return %arg0, %c0_i32 : i32, i32
  }
  func.func @transform_1(%arg0: i32) -> (i32, i32) {
    %c0_i32 = arith.constant 0 : i32
    %c0_i32_0 = arith.constant 0 : i32
    %c0_i32_1 = arith.constant 0 : i32
    return %c0_i32, %c0_i32_0 : i32, i32
  }
  func.func @transform_2(%arg0: i32) -> (i32, i32) {
    %c0_i32 = arith.constant 0 : i32
    %c0_i32_0 = arith.constant 0 : i32
    return %arg0, %c0_i32 : i32, i32
  }
  func.func @transform_3(%arg0: i32) -> (i32, i32) {
    %c0_i32 = arith.constant 0 : i32
    %c0_i32_0 = arith.constant 0 : i32
    return %arg0, %c0_i32 : i32, i32
  }
  func.func @transform_4(%arg0: i32) -> (i32, i32) {
    %c0_i32 = arith.constant 0 : i32
    %c0_i32_0 = arith.constant 0 : i32
    %c0_i32_1 = arith.constant 0 : i32
    return %c0_i32, %c0_i32_0 : i32, i32
  }
  func.func @transform_5(%arg0: i32) -> (i32, i32) {
    %c0_i32 = arith.constant 0 : i32
    %c0_i32_0 = arith.constant 0 : i32
    %c0_i32_1 = arith.constant 0 : i32
    return %c0_i32, %c0_i32_0 : i32, i32
  }
  func.func @transform_6(%arg0: i32) -> (i32, i32) {
    %c0_i32 = arith.constant 0 : i32
    %c0_i32_0 = arith.constant 0 : i32
    %c0_i32_1 = arith.constant 0 : i32
    return %c0_i32, %c0_i32_0 : i32, i32
  }
  func.func @transform_7(%arg0: i32) -> (i32, i32) {
    %c0_i32 = arith.constant 0 : i32
    %c0_i32_0 = arith.constant 0 : i32
    %c0_i32_1 = arith.constant 0 : i32
    return %c0_i32, %c0_i32_0 : i32, i32
  }
  func.func @transform_8(%arg0: i32) -> (i32, i32) {
    %c0_i32 = arith.constant 0 : i32
    %c0_i32_0 = arith.constant 0 : i32
    %c0_i32_1 = arith.constant 0 : i32
    return %c0_i32, %c0_i32_0 : i32, i32
  }
  func.func @transform_9(%arg0: i32) -> (i32, i32) {
    %c0_i32 = arith.constant 0 : i32
    %c0_i32_0 = arith.constant 0 : i32
    %c0_i32_1 = arith.constant 0 : i32
    return %c0_i32, %c0_i32_0 : i32, i32
  }
  func.func @transform_10(%arg0: i32) -> (i32, i32) {
    %c0_i32 = arith.constant 0 : i32
    %c0_i32_0 = arith.constant 0 : i32
    %c0_i32_1 = arith.constant 0 : i32
    return %c0_i32, %c0_i32_0 : i32, i32
  }
  func.func @transform_11(%arg0: i32) -> (i32, i32) {
    %c0_i32 = arith.constant 0 : i32
    %c0_i32_0 = arith.constant 0 : i32
    %c0_i32_1 = arith.constant 0 : i32
    return %c0_i32, %c0_i32_0 : i32, i32
  }
  func.func @transform_12(%arg0: i32) -> (i32, i32) {
    %c0_i32 = arith.constant 0 : i32
    %c0_i32_0 = arith.constant 0 : i32
    %c0_i32_1 = arith.constant 0 : i32
    return %c0_i32, %c0_i32_0 : i32, i32
  }
  func.func @transform_13(%arg0: i32) -> (i32, i32) {
    %c0_i32 = arith.constant 0 : i32
    %c0_i32_0 = arith.constant 0 : i32
    %c0_i32_1 = arith.constant 0 : i32
    return %c0_i32, %c0_i32_0 : i32, i32
  }
  func.func @transform_14(%arg0: i32) -> (i32, i32) {
    %c0_i32 = arith.constant 0 : i32
    %c0_i32_0 = arith.constant 0 : i32
    %c0_i32_1 = arith.constant 0 : i32
    return %c0_i32, %c0_i32_0 : i32, i32
  }
  func.func @transform_15(%arg0: i32) -> (i32, i32) {
    %c0_i32 = arith.constant 0 : i32
    %c0_i32_0 = arith.constant 0 : i32
    %c0_i32_1 = arith.constant 0 : i32
    return %c0_i32, %c0_i32_0 : i32, i32
  }
  func.func @transform_16(%arg0: i32) -> (i32, i32) {
    %c0_i32 = arith.constant 0 : i32
    %c0_i32_0 = arith.constant 0 : i32
    %c0_i32_1 = arith.constant 0 : i32
    return %c0_i32, %c0_i32_0 : i32, i32
  }
  func.func @transform_17(%arg0: i32) -> (i32, i32) {
    %c0_i32 = arith.constant 0 : i32
    %c0_i32_0 = arith.constant 0 : i32
    %c0_i32_1 = arith.constant 0 : i32
    return %c0_i32, %c0_i32_0 : i32, i32
  }
  func.func @transform_18(%arg0: i32) -> (i32, i32) {
    %c0_i32 = arith.constant 0 : i32
    %c0_i32_0 = arith.constant 0 : i32
    %c0_i32_1 = arith.constant 0 : i32
    return %c0_i32, %c0_i32_0 : i32, i32
  }
  func.func @transform_19(%arg0: i32) -> (i32, i32) {
    %c0_i32 = arith.constant 0 : i32
    %c0_i32_0 = arith.constant 0 : i32
    %c0_i32_1 = arith.constant 0 : i32
    return %c0_i32, %c0_i32_0 : i32, i32
  }
  func.func @transform_20(%arg0: i32) -> (i32, i32) {
    %c0_i32 = arith.constant 0 : i32
    %c0_i32_0 = arith.constant 0 : i32
    %c0_i32_1 = arith.constant 0 : i32
    return %c0_i32, %c0_i32_0 : i32, i32
  }
  func.func @transform_21(%arg0: i32) -> (i32, i32) {
    %c0_i32 = arith.constant 0 : i32
    %c0_i32_0 = arith.constant 0 : i32
    %c0_i32_1 = arith.constant 0 : i32
    return %c0_i32, %c0_i32_0 : i32, i32
  }
  func.func @transform_22(%arg0: i32) -> (i32, i32) {
    %c0_i32 = arith.constant 0 : i32
    %c0_i32_0 = arith.constant 0 : i32
    %c0_i32_1 = arith.constant 0 : i32
    return %c0_i32, %c0_i32_0 : i32, i32
  }
  func.func @transform_23(%arg0: i32) -> (i32, i32) {
    %c0_i32 = arith.constant 0 : i32
    %c0_i32_0 = arith.constant 0 : i32
    %c0_i32_1 = arith.constant 0 : i32
    return %c0_i32, %c0_i32_0 : i32, i32
  }
  func.func @transform_24(%arg0: i32) -> (i32, i32) {
    %c0_i32 = arith.constant 0 : i32
    %c0_i32_0 = arith.constant 0 : i32
    %c0_i32_1 = arith.constant 0 : i32
    return %c0_i32, %c0_i32_0 : i32, i32
  }
  func.func @transform_25(%arg0: i32) -> (i32, i32) {
    %c0_i32 = arith.constant 0 : i32
    %c0_i32_0 = arith.constant 0 : i32
    %c0_i32_1 = arith.constant 0 : i32
    return %c0_i32, %c0_i32_0 : i32, i32
  }
  func.func @transform_26(%arg0: i32) -> (i32, i32) {
    %c0_i32 = arith.constant 0 : i32
    %c0_i32_0 = arith.constant 0 : i32
    %c0_i32_1 = arith.constant 0 : i32
    return %c0_i32, %c0_i32_0 : i32, i32
  }
  func.func @transform_27(%arg0: i32) -> (i32, i32) {
    %c0_i32 = arith.constant 0 : i32
    %c0_i32_0 = arith.constant 0 : i32
    return %arg0, %c0_i32 : i32, i32
  }
  func.func @transform_28(%arg0: i32) -> (i32, i32) {
    %c0_i32 = arith.constant 0 : i32
    %c0_i32_0 = arith.constant 0 : i32
    return %arg0, %c0_i32 : i32, i32
  }
}

</mosaic_0001>

<bundles_post_ra>
// kernel: tpu_custom_call.1
= control target key start
LH: loop header
LB: loop body
LE: loop exit
PB: predicated region body
PF: predicated region fallthrough
CT: control target
= control target key end

     0   :  { %s3572_s0 = inlined_call_operand.hbm [shape: bf16[16,256], index: 0, kind: input, shape index: {}]   ;;  %s3573_s1 = inlined_call_operand.<no memory space> [shape: f32[1,1], index: 1, kind: input, shape index: {}]   ;;  %s3574_s2 = inlined_call_operand.hbm [shape: f32[16,10], index: 2, kind: input, shape index: {}]   ;;  %s3575_s3 = inlined_call_operand.hbm [shape: f32[16,20], index: 3, kind: input, shape index: {}]   ;;  %s3576_s4 = inlined_call_operand.vmem [shape: bf16[256,128], index: 4, kind: input, shape index: {}]   ;;  %s3577_s5 = inlined_call_operand.hbm [shape: f32[1,128], index: 5, kind: input, shape index: {}]   ;;  %s3578_s6 = inlined_call_operand.hbm [shape: bf16[128,128], index: 6, kind: input, shape index: {}]   ;;  %s3579_s7 = inlined_call_operand.hbm [shape: f32[1,128], index: 7, kind: input, shape index: {}]   ;;  %s3580_s8 = inlined_call_operand.vmem [shape: bf16[128,10], index: 8, kind: input, shape index: {}]   ;;  %s3581_s9 = inlined_call_operand.hbm [shape: f32[1,10], index: 9, kind: input, shape index: {}]   ;;  %s3582_s10 = inlined_call_operand.hbm [shape: bf16[256,128], index: 10, kind: input, shape index: {}]   ;;  %s3583_s11 = inlined_call_operand.hbm [shape: bf16[10,128], index: 11, kind: input, shape index: {}]   ;;  %s3584_s12 = inlined_call_operand.hbm [shape: f32[1,128], index: 12, kind: input, shape index: {}]   ;;  %s3585_s13 = inlined_call_operand.hbm [shape: bf16[128,128], index: 13, kind: input, shape index: {}]   ;;  %s3586_s14 = inlined_call_operand.hbm [shape: f32[1,128], index: 14, kind: input, shape index: {}]   ;;  %s3587_s15 = inlined_call_operand.hbm [shape: bf16[128,256], index: 15, kind: input, shape index: {}]   ;;  %s3588_s16 = inlined_call_operand.hbm [shape: f32[1,256], index: 16, kind: input, shape index: {}]   ;;  %s3589_s17 = inlined_call_operand.vmem [shape: bf16[256,40], index: 17, kind: input, shape index: {}]   ;;  %s3590_s18 = inlined_call_operand.vmem [shape: f32[1,40], index: 18, kind: input, shape index: {}]   ;;  %s3591_s19 = inlined_call_operand.hbm [shape: bf16[30,128], index: 19, kind: input, shape index: {}]   ;;  %s3592_s20 = inlined_call_operand.vmem [shape: f32[1,128], index: 20, kind: input, shape index: {}]   ;;  %s3593_s21 = inlined_call_operand.hbm [shape: bf16[128,128], index: 21, kind: input, shape index: {}]   ;;  %s3594_s22 = inlined_call_operand.hbm [shape: f32[1,128], index: 22, kind: input, shape index: {}]   ;;  %s3595_s23 = inlined_call_operand.hbm [shape: bf16[128,128], index: 23, kind: input, shape index: {}]   ;;  %s3596_s24 = inlined_call_operand.vmem [shape: f32[1,128], index: 24, kind: input, shape index: {}]   ;;  %s3597_s25 = inlined_call_operand.vmem [shape: bf16[128,256], index: 25, kind: input, shape index: {}]   ;;  %s3598_s26 = inlined_call_operand.vmem [shape: f32[1,256], index: 26, kind: input, shape index: {}]   ;;  %s3599_s27 = inlined_call_operand.hbm [shape: f32[16,256], index: 27, kind: output, shape index: {0}]   ;;  %s3600_s28 = inlined_call_operand.hbm [shape: f32[16,128], index: 28, kind: output, shape index: {1}]  }
   0x1   :  { %3607 = sst [smem:[#allocation47_spill]] %s3572_s0 }
   0x2   :  { %3608 = sst [smem:[#allocation48_spill]] %s3573_s1 }
   0x3   :  { %3609 = sst [smem:[#allocation49_spill]] %s3574_s2 }
   0x4   :  { %3610 = sst [smem:[#allocation50_spill]] %s3575_s3 }
   0x5   :  { %3611 = sst [smem:[#allocation51_spill]] %s3576_s4 }
   0x6   :  { %3612 = sst [smem:[#allocation52_spill]] %s3577_s5 }
   0x7   :  { %3613 = sst [smem:[#allocation53_spill]] %s3578_s6 }
   0x8   :  { %3614 = sst [smem:[#allocation54_spill]] %s3579_s7 }
   0x9   :  { %3615 = sst [smem:[#allocation55_spill]] %s3580_s8 }
   0xa   :  { %3616 = sst [smem:[#allocation56_spill]] %s3581_s9 }
   0xb   :  { %3617 = sst [smem:[#allocation57_spill]] %s3582_s10 }
   0xc   :  { %3618 = sst [smem:[#allocation58_spill]] %s3583_s11 }
   0xd   :  { %3619 = sst [smem:[#allocation59_spill]] %s3584_s12 }
   0xe   :  { %3620 = sst [smem:[#allocation60_spill]] %s3598_s26 }
   0xf   :  { %3621 = sst [smem:[#allocation61_spill]] %s3599_s27 }
  0x10   :  { %3622 = sst [smem:[#allocation62_spill]] %s3600_s28 }
  0x11   :  { %s3623_s9 = sld [smem:[#allocation48_spill]] }
  0x17   :  { %v34_v0 = vstv %s3623_s9 }
  0x18   :  { %35 = vst [vmem:[#allocation2] sm:$0x1] %v34_v0 }
  0x19   :  { %36 = vsyncpa [#allocation4], 0 }
  0x1a   :  { %37 = vsyncpa [#allocation7], 0 }
  0x1b   :  { %38 = vsyncpa [#allocation10], 0 }
  0x1c   :  { %39 = vsyncpa [#allocation13], 0 }
  0x1d   :  { %40 = vsyncpa [#allocation16], 0 }
  0x1e   :  { %41 = vsyncpa [#allocation19], 0 }
  0x1f   :  { %42 = vsyncpa [#allocation22], 0 }
  0x20   :  { %43 = vsyncpa [#allocation25], 0 }
  0x21   :  { %44 = vsyncpa [#allocation28], 0 }
  0x22   :  { %45 = vsyncpa [#allocation31], 0 }
  0x23   :  { %46 = vsyncpa [#allocation5], 0 }
  0x24   :  { %47 = vsyncpa [#allocation34], 0  ;;  %s3624_s6 = sld [smem:[#allocation49_spill]]  ;;  %s3022_s0 = smov [#allocation6]  }
  0x25   :  { %s69_s11 = sshll.u32 %s3022_s0, 4  ;;  %s3625_s7 = sld [smem:[#allocation52_spill]]  ;;  %s70_s11 = int_to_ptr.vmem [resolvable:$true] %s69_s11 }
  0x26   :  { %s3603_s1 = smov 128   ;;  %s3605_s4 = smov 8  }
  0x27   :  { %s3025_s8 = smov [#allocation9]   ;;  %s3626_s3 = sld [smem:[#allocation54_spill]] }
  0x28   :  { %s98_s5 = sshll.u32 %s3025_s8, 4  ;;  %s3026_s0 = smov [#allocation12]   ;;  %s99_s5 = int_to_ptr.vmem [resolvable:$true] %s98_s5 }
  0x29   :  { %s122_s27 = sshll.u32 %s3026_s0, 4  ;;  %s3028_s9 = smov 64   ;;  %s123_s27 = int_to_ptr.vmem [resolvable:$true] %s122_s27 }
  0x2a   :  { %s67_s10 = sshll.u32 %s3624_s6, 4  ;;  %s3029_s30 = smov 4   ;;  %s68_s10 = int_to_ptr.hbm [resolvable:$true] %s67_s10 }
  0x2b   :  { %s96_s12 = sshll.u32 %s3625_s7, 4  ;;  %s3627_s7 = sld [smem:[#allocation57_spill]]  ;;  %s97_s12 = int_to_ptr.hbm [resolvable:$true] %s96_s12 }
  0x2c   :  { %75 = dma.hbm_to_vmem [thread:$0]  %s68_s10, 256, %s70_s11, [#allocation7], %s3603_s1, %s3603_s1, %s3605_s4  }
  0x2d   :  { %s120_s6 = sshll.u32 %s3626_s3, 4  ;;  %s3027_s10 = smov [#allocation15]   ;;  %s121_s6 = int_to_ptr.hbm [resolvable:$true] %s120_s6 }
  0x2e   :  { %101 = dma.hbm_to_vmem [thread:$0]  %s97_s12, 16, %s99_s5, [#allocation10]  }
  0x2f   :  { %125 = dma.hbm_to_vmem [thread:$0]  %s121_s6, 16, %s123_s27, [#allocation13]  }
  0x30   :  { %s145_s11 = sshll.u32 %s3027_s10, 4  ;;  %s3628_s4 = sld [smem:[#allocation59_spill]]  ;;  %s146_s11 = int_to_ptr.vmem [resolvable:$true] %s145_s11 }
  0x31   :  { %s143_s26 = sshll.u32 %s3627_s7, 4  ;;  %s194_s3 = sshll.u32 %s3586_s14, 4  ;;  %s144_s26 = int_to_ptr.hbm [resolvable:$true] %s143_s26  ;;  %s195_s3 = int_to_ptr.hbm [resolvable:$true] %s194_s3 }
  0x32   :  { %151 = dma.hbm_to_vmem [thread:$0]  %s144_s26, 2048, %s146_s11, [#allocation16], %s3028_s9, %s3028_s9, %s3029_s30  }
  0x33   :  { %s3030_s27 = smov [#allocation18]   ;;  %s3031_s0 = smov [#allocation21]  }
  0x34   :  { %s172_s6 = sshll.u32 %s3030_s27, 4  ;;  %s196_s1 = sshll.u32 %s3031_s0, 4  ;;  %s173_s6 = int_to_ptr.vmem [resolvable:$true] %s172_s6  ;;  %s197_s1 = int_to_ptr.vmem [resolvable:$true] %s196_s1 }
  0x35   :  { %s218_s2 = sshll.u32 %s3588_s16, 4  ;;  %s247_s10 = sshll.u32 %s3593_s21, 4  ;;  %s219_s2 = int_to_ptr.hbm [resolvable:$true] %s218_s2  ;;  %s248_s10 = int_to_ptr.hbm [resolvable:$true] %s247_s10 }
  0x36   :  { %s170_s28 = sshll.u32 %s3628_s4, 4  ;;  %s3032_s11 = smov [#allocation24]   ;;  %s171_s28 = int_to_ptr.hbm [resolvable:$true] %s170_s28 }
  0x37   :  { %175 = dma.hbm_to_vmem [thread:$0]  %s171_s28, 16, %s173_s6, [#allocation19]  }
  0x38   :  { %199 = dma.hbm_to_vmem [thread:$0]  %s195_s3, 16, %s197_s1, [#allocation22]  }
  0x39   :  { %s220_s14 = sshll.u32 %s3032_s11, 4  ;;  %s3033_s8 = smov [#allocation27]   ;;  %s221_s14 = int_to_ptr.vmem [resolvable:$true] %s220_s14 }
  0x3a   :  { %223 = dma.hbm_to_vmem [thread:$0]  %s219_s2, 32, %s221_s14, [#allocation25]  }
  0x3b   :  { %s249_s28 = sshll.u32 %s3033_s8, 4  ;;  %s3629_s27 = sld [smem:[#allocation47_spill]]  ;;  %s250_s28 = int_to_ptr.vmem [resolvable:$true] %s249_s28 }
  0x3c   :  { %255 = dma.hbm_to_vmem [thread:$0]  %s248_s10, 1024, %s250_s28, [#allocation28], %s3028_s9, %s3028_s9, %s3029_s30  }
  0x3d   :  { %s3630_s21 = sld [smem:[#allocation50_spill]]  ;;  %s3034_s1 = smov [#allocation3]  }
  0x3e   :  { %s54_s4 = sshll.u32 %s3034_s1, 4  ;;  %s3631_s29 = smov 8   ;;  %s55_s4 = int_to_ptr.vmem [resolvable:$true] %s54_s4 }
  0x3f   :  { %s3632_s2 = smov 128   ;;  %s3035_s7 = smov [#allocation8]  }
  0x40   :  { %s82_s26 = sshll.u32 %s3035_s7, 4  ;;  %s3633_s8 = sld [smem:[#allocation53_spill]]  ;;  %s83_s26 = int_to_ptr.vmem [resolvable:$true] %s82_s26 }
  0x41   :  { %s52_s6 = sshll.u32 %s3629_s27, 4  ;;  %s3634_s5 = sld [smem:[#allocation56_spill]]  ;;  %s53_s6 = int_to_ptr.hbm [resolvable:$true] %s52_s6 }
  0x42   :  { %60 = dma.hbm_to_vmem [thread:$0]  %s53_s6, 256, %s55_s4, [#allocation4], %s3632_s2, %s3632_s2, %s3631_s29  }
  0x43   :  { %s80_s0 = sshll.u32 %s3630_s21, 4  ;;  %s3036_s16 = smov [#allocation11]   ;;  %s81_s0 = int_to_ptr.hbm [resolvable:$true] %s80_s0 }
  0x44   :  { %88 = dma.hbm_to_vmem [thread:$0]  %s81_s0, 256, %s83_s26, [#allocation7], %s3632_s2, %s3632_s2, %s3631_s29  }
  0x45   :  { %s108_s3 = sshll.u32 %s3036_s16, 4  ;;  %s3037_s6 = smov [#allocation14]   ;;  %s109_s3 = int_to_ptr.vmem [resolvable:$true] %s108_s3 }
  0x46   :  { %s106_s12 = sshll.u32 %s3633_s8, 4  ;;  %s135_s21 = sshll.u32 %s3037_s6, 4  ;;  %s107_s12 = int_to_ptr.hbm [resolvable:$true] %s106_s12  ;;  %s136_s21 = int_to_ptr.vmem [resolvable:$true] %s135_s21 }
  0x47   :  { %s133_s27 = sshll.u32 %s3634_s5, 4  ;;  %s3635_s7 = sld [smem:[#allocation58_spill]]  ;;  %s134_s27 = int_to_ptr.hbm [resolvable:$true] %s133_s27 }
  0x48   :  { %114 = dma.hbm_to_vmem [thread:$0]  %s107_s12, 1024, %s109_s3, [#allocation10], %s3028_s9, %s3028_s9, %s3029_s30  }
  0x49   :  { %138 = dma.hbm_to_vmem [thread:$0]  %s134_s27, 16, %s136_s21, [#allocation13]  }
  0x4a   :  { %s180_s14 = sshll.u32 %s3585_s13, 4  ;;  %s3038_s8 = smov [#allocation17]   ;;  %s181_s14 = int_to_ptr.hbm [resolvable:$true] %s180_s14 }
  0x4b   :  { %s158_s10 = sshll.u32 %s3038_s8, 4  ;;  %s3039_s12 = smov [#allocation20]   ;;  %s159_s10 = int_to_ptr.vmem [resolvable:$true] %s158_s10 }
  0x4c   :  { %s182_s28 = sshll.u32 %s3039_s12, 4  ;;  %s204_s3 = sshll.u32 %s3587_s15, 4  ;;  %s183_s28 = int_to_ptr.vmem [resolvable:$true] %s182_s28  ;;  %s205_s3 = int_to_ptr.hbm [resolvable:$true] %s204_s3 }
  0x4d   :  { %s156_s11 = sshll.u32 %s3635_s7, 4  ;;  %s232_s6 = sshll.u32 %s3591_s19, 4  ;;  %s157_s11 = int_to_ptr.hbm [resolvable:$true] %s156_s11  ;;  %s233_s6 = int_to_ptr.hbm [resolvable:$true] %s232_s6 }
  0x4e   :  { %164 = dma.hbm_to_vmem [thread:$0]  %s157_s11, 128, %s159_s10, [#allocation16], %s3028_s9, %s3028_s9, %s3029_s30  }
  0x4f   :  { %188 = dma.hbm_to_vmem [thread:$0]  %s181_s14, 1024, %s183_s28, [#allocation19], %s3028_s9, %s3028_s9, %s3029_s30  }
  0x50   :  { %s3040_s21 = smov [#allocation23]   ;;  %s3041_s4 = smov [#allocation26]  }
  0x51   :  { %s206_s1 = sshll.u32 %s3040_s21, 4  ;;  %s234_s15 = sshll.u32 %s3041_s4, 4  ;;  %s207_s1 = int_to_ptr.vmem [resolvable:$true] %s206_s1  ;;  %s235_s15 = int_to_ptr.vmem [resolvable:$true] %s234_s15 }
  0x52   :  { %212 = dma.hbm_to_vmem [thread:$0]  %s205_s3, 2048, %s207_s1, [#allocation22], %s3632_s2, %s3632_s2, %s3631_s29  }
  0x53   :  { %s261_s0 = sshll.u32 %s3594_s22, 4  ;;  %s271_s14 = sshll.u32 %s3595_s23, 4  ;;  %s262_s0 = int_to_ptr.hbm [resolvable:$true] %s261_s0  ;;  %s272_s14 = int_to_ptr.hbm [resolvable:$true] %s271_s14 }
  0x54   :  { %240 = dma.hbm_to_vmem [thread:$0]  %s233_s6, 256, %s235_s15, [#allocation25], %s3028_s9, %s3028_s9, %s3029_s30  }
  0x55   :  { %s3042_s8 = smov [#allocation29]   ;;  %s3043_s12 = smov [#allocation30]  }
  0x56   :  { %s263_s10 = sshll.u32 %s3042_s8, 4  ;;  %s273_s28 = sshll.u32 %s3043_s12, 4  ;;  %s264_s10 = int_to_ptr.vmem [resolvable:$true] %s263_s10  ;;  %s274_s28 = int_to_ptr.vmem [resolvable:$true] %s273_s28 }
  0x57   :  { %266 = dma.hbm_to_vmem [thread:$0]  %s262_s0, 16, %s264_s10, [#allocation28]  }
  0x58   :  { %279 = dma.hbm_to_vmem [thread:$0]  %s272_s14, 1024, %s274_s28, [#allocation31], %s3028_s9, %s3028_s9, %s3029_s30  }
  0x59   :  { %2998 = dma.done.wait [#allocation4], 256  }
  0x5a   :  { %2999 = vsyncadd [#allocation4], 4294967040 }
  0x5b   :  { %3000 = dma.done.wait [#allocation7], 512  }
  0x5c   :  { %3001 = vsyncadd [#allocation7], 4294966784 }
  0x5d   :  { %3002 = dma.done.wait [#allocation10], 1040  }
  0x5e   :  { %3003 = vsyncadd [#allocation10], 4294966256 }
  0x5f   :  { %3004 = dma.done.wait [#allocation13], 32  }
  0x60   :  { %3005 = vsyncadd [#allocation13], 4294967264 }
  0x61   :  { %3006 = dma.done.wait [#allocation16], 2176  }
  0x62   :  { %3007 = vsyncadd [#allocation16], 4294965120 }
  0x63   :  { %3008 = dma.done.wait [#allocation19], 1040  }
  0x64   :  { %3009 = vsyncadd [#allocation19], 4294966256 }
  0x65   :  { %3010 = dma.done.wait [#allocation22], 2064  }
  0x66   :  { %3011 = vsyncadd [#allocation22], 4294965232 }
  0x67   :  { %3012 = dma.done.wait [#allocation25], 288  }
  0x68   :  { %3013 = vsyncadd [#allocation25], 4294967008 }
  0x69   :  { %3014 = dma.done.wait [#allocation28], 1040  }
  0x6a   :  { %3015 = vsyncadd [#allocation28], 4294966256 }
  0x6b   :  { %3016 = dma.done.wait [#allocation31], 1024  }
  0x6c   :  { %3017 = vsyncadd [#allocation31], 4294966272  ;;  %s3636_s9 = sld [smem:[#allocation51_spill]]  ;;  %v2356_v7 = vld [vmem:[#allocation11 + $0x38] sm:$0xff]  ;;  %v2355_v10 = vld [vmem:[#allocation11 + $0x30] sm:$0xff]  ;;  %vm726_vm4 = vcmask 80896  }
  0x6d   :  { %602 = vmatpush.bf16.msra.mxu2 %v2356_v7  ;;  %v2354_v11 = vld [vmem:[#allocation11 + $0x28] sm:$0xff]  ;;  %v2353_v14 = vld [vmem:[#allocation11 + $0x20] sm:$0xff]  ;;  %v2332_v22 = vld [vmem:[#allocation3 + $0x4] sm:$0xf0]  ;;  %s3637_s1 = sld [smem:[#allocation55_spill]]  ;;  %s3044_s16 = smov 20  }
  0x6e   :  { %v1831_v21 = vld [vmem:[#allocation3] sm:$0xf]  ;;  %v2331_v23 = vld [vmem:[#allocation3 + $0x4] sm:$0xf]  ;;  %v1833_v24 = vld [vmem:[#allocation3 + $0x8] sm:$0xf0] }
  0x6f   :  { %v3335_v25 = vor.u32 %v2332_v22, %v1831_v21  ;;  %v3337_v26 = vor.u32 %v2331_v23, %v1833_v24  ;;  %v2352_v27 = vld [vmem:[#allocation11 + $0x18] sm:$0xff]  ;;  %v2351_v28 = vld [vmem:[#allocation11 + $0x10] sm:$0xff]  ;;  %v2350_v29 = vld [vmem:[#allocation11 + $0x8] sm:$0xff]  ;;  %vm818_vm5 = vcmask 1044480   ;;  %s3045_s3 = smov 10   ;;  %vm1413_vm14 = vcmask 1046528  }
  0x70   :  { %v2349_v30 = vld [vmem:[#allocation11] sm:$0xff]  ;;  %v2495_v37 = vld [vmem:[#allocation9] ss:$0 sm:$0xff]  ;;  %v701_v51 = vld [vmem:[#allocation2] sm:$0x1]  ;;  %s3047_s0 = smov 60  }
  0x71   :  { %603 = vmatpush.bf16.msra.mxu2 %v2355_v10  ;;  %2456 = vpush %v701_v51  ;;  %v2496_v53 = vld [vmem:[#allocation12] ss:$0 sm:$0xff]  ;;  %v2497_v7 = vld [vmem:[#allocation14] ss:$0 sm:$0xff]  ;;  %v2379_v23 = vld [vmem:[#allocation15 + $0x70] sm:$0xff]  ;;  %vm1386_vm15 = vcmask 162816  }
  0x72   :  { %v2340_v1 = vld [vmem:[%s3636_s9 + $0x38] sm:$0xff]  ;;  %v2339_v3 = vld [vmem:[%s3636_s9 + $0x30] sm:$0xff]  ;;  %v2338_v5 = vld [vmem:[%s3636_s9 + $0x28] sm:$0xff]  ;;  %s3048_s13 = smov [#allocation33]   ;;  %s3639_s4 = sld [smem:[#allocation60_spill]] }
  0x73   :  { %v2348_v2 = vld [vmem:[%s3636_s9 + $0x78] sm:$0xff]  ;;  %503 = vmatpush.bf16.msra.mxu0 %v2340_v1  ;;  %v2347_v4 = vld [vmem:[%s3636_s9 + $0x70] sm:$0xff]  ;;  %v2346_v6 = vld [vmem:[%s3636_s9 + $0x68] sm:$0xff]  ;;  %s1800_s27 = sshll.u32 %s3048_s13, 4  ;;  %s3049_s15 = smov [#allocation32]   ;;  %s1801_s27 = int_to_ptr.vmem [resolvable:$true] %s1800_s27 }
  0x74   :  { %517 = vmatpush.bf16.msra.mxu1 %v2348_v2  ;;  %v2337_v8 = vld [vmem:[%s3636_s9 + $0x20] sm:$0xff]  ;;  %v2336_v12 = vld [vmem:[%s3636_s9 + $0x18] sm:$0xff]  ;;  %v2335_v15 = vld [vmem:[%s3636_s9 + $0x10] sm:$0xff]  ;;  %s1787_s7 = sshll.u32 %s3049_s15, 4  ;;  %s1788_s7 = int_to_ptr.vmem [resolvable:$true] %s1787_s7 }
  0x75   :  { %v2345_v9 = vld [vmem:[%s3636_s9 + $0x60] sm:$0xff]  ;;  %v2344_v13 = vld [vmem:[%s3636_s9 + $0x58] sm:$0xff]  ;;  %604 = vmatpush.bf16.msra.mxu2 %v2354_v11  ;;  %v2343_v16 = vld [vmem:[%s3636_s9 + $0x50] sm:$0xff] }
  0x76   :  { %v2334_v17 = vld [vmem:[%s3636_s9 + $0x8] sm:$0xff]  ;;  %v2333_v19 = vld [vmem:[%s3636_s9] sm:$0xff]  ;;  %v2364_v31 = vld [vmem:[%s3637_s1 + $0x38] sm:$0xff] }
  0x77   :  { %504 = vmatpush.bf16.msra.mxu0 %v2339_v3  ;;  %v2342_v18 = vld [vmem:[%s3636_s9 + $0x48] sm:$0xff]  ;;  %v2341_v20 = vld [vmem:[%s3636_s9 + $0x40] sm:$0xff]  ;;  %687 = vmatpush.bf16.msra.mxu3 %v2364_v31  ;;  %v2363_v32 = vld [vmem:[%s3637_s1 + $0x30] sm:$0xff]  ;;  %s3638_s9 = sld [smem:[#allocation62_spill]] }
  0x78   :  { %518 = vmatpush.bf16.msra.mxu1 %v2347_v4  ;;  %v2362_v33 = vld [vmem:[%s3637_s1 + $0x28] sm:$0xff]  ;;  %v2361_v34 = vld [vmem:[%s3637_s1 + $0x20] sm:$0xff]  ;;  %v2360_v47 = vld [vmem:[%s3637_s1 + $0x18] sm:$0xff] }
  0x79   :  { %605 = vmatpush.bf16.msra.mxu2 %v2353_v14  ;;  %v2359_v48 = vld [vmem:[%s3637_s1 + $0x10] sm:$0xff]  ;;  %v2358_v49 = vld [vmem:[%s3637_s1 + $0x8] sm:$0xff]  ;;  %v2357_v50 = vld [vmem:[%s3637_s1] sm:$0xff] }
  0x7a   :  { %v2380_v21 = vld [vmem:[#allocation15 + $0x78] sm:$0xff]  ;;  %v2371_v24 = vld [vmem:[#allocation15 + $0x30] sm:$0xff]  ;;  %v1967_v51 = vld [vmem:[#allocation17] sm:$0xf] }
  0x7b   :  { %505 = vmatpush.bf16.msra.mxu0 %v2338_v5  ;;  %688 = vmatpush.bf16.msra.mxu3 %v2363_v32  ;;  %v2372_v22 = vld [vmem:[#allocation15 + $0x38] sm:$0xff] }
  0x7c   :  { %519 = vmatpush.bf16.msra.mxu1 %v2346_v6 }
  0x7d   :  { %606 = vmatpush.bf16.msra.mxu2 %v2352_v27  ;;  %v2378_v27 = vld [vmem:[#allocation15 + $0x68] sm:$0xff]  ;;  %s1802_s21 = sshll.u32 %s3638_s9, 4  ;;  %s1803_s21 = int_to_ptr.hbm [resolvable:$true] %s1802_s21 }
  0x7f   :  { %506 = vmatpush.bf16.msra.mxu0 %v2337_v8  ;;  %689 = vmatpush.bf16.msra.mxu3 %v2362_v33 }
  0x80   :  { %520 = vmatpush.bf16.msra.mxu1 %v2345_v9  ;;  %v719_v9 = vld [vmem:[#allocation6] sm:$0xff] }
  0x81   :  { %607 = vmatpush.bf16.msra.mxu2 %v2351_v28  ;;  %v2370_v28 = vld [vmem:[#allocation15 + $0x28] sm:$0xff] }
  0x83   :  { %507 = vmatpush.bf16.msra.mxu0 %v2336_v12  ;;  %690 = vmatpush.bf16.msra.mxu3 %v2361_v34 }
  0x84   :  { %521 = vmatpush.bf16.msra.mxu1 %v2344_v13 }
  0x85   :  { %608 = vmatpush.bf16.msra.mxu2 %v2350_v29  ;;  %v2377_v29 = vld [vmem:[#allocation15 + $0x60] sm:$0xff] }
  0x87   :  { %508 = vmatpush.bf16.msra.mxu0 %v2335_v15  ;;  %691 = vmatpush.bf16.msra.mxu3 %v2360_v47  ;;  %v2366_v47 = vld [vmem:[#allocation15 + $0x8] sm:$0xff] }
  0x88   :  { %522 = vmatpush.bf16.msra.mxu1 %v2343_v16  ;;  %v720_v16 = vld [vmem:[#allocation6 + $0x8] sm:$0xff] }
  0x89   :  { %609 = vmatpush.bf16.msra.mxu2 %v2349_v30 }
  0x8b   :  { %509 = vmatpush.bf16.msra.mxu0 %v2334_v17  ;;  %692 = vmatpush.bf16.msra.mxu3 %v2359_v48  ;;  %v2373_v48 = vld [vmem:[#allocation15 + $0x40] sm:$0xff] }
  0x8c   :  { %523 = vmatpush.bf16.msra.mxu1 %v2342_v18 }
  0x8d   :  { %946 = vmatpush.bf16.msrb.mxu2 %v2380_v21  ;;  %v2385_v21 = vld [vmem:[#allocation20 + $0x18] sm:$0xff] }
  0x8f   :  { %510 = vmatpush.bf16.msra.mxu0 %v2333_v19  ;;  %693 = vmatpush.bf16.msra.mxu3 %v2358_v49  ;;  %v2365_v49 = vld [vmem:[#allocation15] sm:$0xff] }
  0x90   :  { %524 = vmatpush.bf16.msra.mxu1 %v2341_v20 }
  0x91   :  { %947 = vmatpush.bf16.msrb.mxu2 %v2379_v23  ;;  %v2383_v23 = vld [vmem:[#allocation20 + $0x8] sm:$0xff] }
  0x92   :  { %511 = vmatmul.bf16.vlgmr.msra.gmra.mxu0 %v3335_v25 }
  0x93   :  { %525 = vmatmul.bf16.vlgmr.msra.gmra.mxu1 %v3337_v26  ;;  %694 = vmatpush.bf16.msra.mxu3 %v2357_v50  ;;  %v1357_v50 = vld [vmem:[#allocation8 + $0x8] sm:$0xff] }
  0x94   :  { %932 = vmatpush.bf16.msrb.mxu1 %v2372_v22  ;;  %v2384_v22 = vld [vmem:[#allocation20 + $0x10] sm:$0xff] }
  0x95   :  { %948 = vmatpush.bf16.msrb.mxu2 %v2378_v27  ;;  %v2124_v27 = vld [vmem:[#allocation23 + $0x70] sm:$0xf] }
  0x98   :  { %933 = vmatpush.bf16.msrb.mxu1 %v2371_v24  ;;  %v2382_v24 = vld [vmem:[#allocation20] sm:$0xff] }
  0x99   :  { %949 = vmatpush.bf16.msrb.mxu2 %v2377_v29  ;;  %v2404_v29 = vld [vmem:[#allocation23 + $0x74] sm:$0xf] }
  0x9c   :  { %934 = vmatpush.bf16.msrb.mxu1 %v2370_v28  ;;  %v2405_v28 = vld [vmem:[#allocation23 + $0x74] sm:$0xf0] }
  0xa2   :  { %s2457_s30 = spop %2456 }
  0xa3   :  { %v703_v60 = vstv %s2457_s30 }
  0xa4   :  { %2504 = vrcp.f32 %v703_v60  ;;  %v715_v63 = vand.u32 2147483648, %v703_v60  ;;  %vm709_vm0 = vweird.f32 %v703_v60  ;;  %v713_v1 = vand.u32 2147483647, %v703_v60 }
  0xa6   :  { %v716_v3 = vor.u32 1.1754944e-38, %v715_v63  ;;  %vm714_vm3 = vcmp.eq.f32.partialorder %v713_v1, 8.507059e+37 }
  0xaa   :  { %v2505_v61 = vpop.eup %2504 }
  0xab   :  { %v705_v62 = vmul.f32 %v2505_v61, %v703_v60  ;;  %vm710_vm1 = vweird.f32 %v2505_v61 }
  0xac   :  { %vm711_vm2 = vmor %vm709_vm0, %vm710_vm1  ;;  %vm1409_vm0 = vcmask 244736   ;;  %vm1772_vm1 = vcmask 326656  }
  0xad   :  { %v706_v0 = vsub.f32 1.0, %v705_v62 }
  0xaf   :  { %v707_v2 = vmul.f32 %v2505_v61, %v706_v0 }
  0xb1   :  { %v708_v4 = vadd.f32 %v2505_v61, %v707_v2 }
  0xb3   :  { %v712_v5 = vsel %vm711_vm2, %v2505_v61, %v708_v4  ;;  %vm1775_vm2 = vcmask 490496  }
  0xb4   :  { %v717_v6 = vsel %vm714_vm3, %v716_v3, %v712_v5  ;;  %vm1778_vm3 = vcmask 654336  }
  0xb5   :  { %2458 = vpush %v717_v6 }
  0xe6   :  { %s2459_s5 = spop %2458 }
  0xe7   :  { %v723_v12 = vstv %s2459_s5 }
 0x10f   :  { %v512_v35 = vpop.f32.mrf.mxu0 }
 0x110   :  { %v526_v36 = vpop.f32.mrf.mxu1  ;;  %v513_v38 = vadd.f32 %v2495_v37, %v512_v35 }
 0x112   :  { %v527_v40 = vadd.f32 %v526_v36, %v513_v38 }
 0x114   :  { %v531_v44 = vmax.f32 %v527_v40, 0.0  ;;  %v2369_v40 = vld [vmem:[#allocation15 + $0x20] sm:$0xff] }
 0x115   :  { %935 = vmatpush.bf16.msrb.mxu1 %v2369_v40  ;;  %v2401_v40 = vld [vmem:[#allocation23 + $0x54] sm:$0xf0] }
 0x117   :  { %v514_v39 = vpop.f32.mrf.mxu0 }
 0x118   :  { %v515_v41 = vadd.f32 %v2495_v37, %v514_v39  ;;  %v528_v42 = vpop.f32.mrf.mxu1 }
 0x11a   :  { %v529_v43 = vadd.f32 %v528_v42, %v515_v41  ;;  %v2376_v41 = vld [vmem:[#allocation15 + $0x58] sm:$0xff] }
 0x11b   :  { %950 = vmatpush.bf16.msrb.mxu2 %v2376_v41  ;;  %v2368_v42 = vld [vmem:[#allocation15 + $0x18] sm:$0xff]  ;;  %v2400_v41 = vld [vmem:[#allocation23 + $0x54] sm:$0xf] }
 0x11c   :  { %v532_v45 = vmax.f32 %v529_v43, 0.0  ;;  %v2375_v43 = vld [vmem:[#allocation15 + $0x50] sm:$0xff]  ;;  %936 = vmatpush.bf16.msrb.mxu1 %v2368_v42  ;;  %v2110_v42 = vld [vmem:[#allocation23 + $0x58] sm:$0xf0] }
 0x11e   :  { %v533_v46 = vpack.c.bf16 %v532_v45, %v531_v44  ;;  %v2367_v44 = vld [vmem:[#allocation15 + $0x10] sm:$0xff]  ;;  %v2374_v45 = vld [vmem:[#allocation15 + $0x48] sm:$0xff] }
 0x11f   :  { %951 = vmatpush.bf16.msrb.mxu2 %v2375_v43 }
 0x120   :  { %610 = vmatmul.bf16.vlgmr.msra.gmra.mxu2 %v533_v46  ;;  %937 = vmatpush.bf16.msrb.mxu1 %v2367_v44  ;;  %v1356_v46 = vld [vmem:[#allocation8] sm:$0xff]  ;;  %v2113_v44 = vor.u32 %v2400_v41, %v2110_v42 }
 0x121   :  { %1360 = vrot.lane.b32.xlu2 %v1356_v46, %s3044_s16  ;;  %v2399_v46 = vld [vmem:[#allocation23 + $0x44] sm:$0xf0] }
 0x123   :  { %952 = vmatpush.bf16.msrb.mxu2 %v2374_v45  ;;  %v2100_v45 = vld [vmem:[#allocation23 + $0x40] sm:$0xf] }
 0x124   :  { %938 = vmatpush.bf16.msrb.mxu1 %v2366_v47  ;;  %v2398_v47 = vld [vmem:[#allocation23 + $0x44] sm:$0xf] }
 0x127   :  { %953 = vmatpush.bf16.msrb.mxu2 %v2373_v48  ;;  %v2102_v48 = vld [vmem:[#allocation23 + $0x48] sm:$0xf0] }
 0x128   :  { %939 = vmatpush.bf16.msrb.mxu1 %v2365_v49 }
 0x129   :  { %1362 = vrot.lane.b32.xlu2 %v1357_v50, %s3044_s16  ;;  %v2101_v50 = vor.u32 %v2399_v46, %v2100_v45  ;;  %v2409_v45 = vld [vmem:[%s3589_s17 + $0x18] sm:$0xff] }
 0x12a   :  { %v2417_v46 = vld [vmem:[%s3589_s17 + $0x58] sm:$0xff] }
 0x12b   :  { %940 = vmatmul.bf16.vlgmr.msrb.gmra.mxu1 %v3335_v25 }
 0x130   :  { %954 = vmatmul.bf16.vlgmr.msrb.gmra.mxu2 %v3337_v26 }
 0x1a3   :  { %v611_v52 = vpop.f32.mrf.mxu2 }
 0x1a4   :  { %v612_v54 = vadd.f32 %v2496_v53, %v611_v52  ;;  %v2381_v52 = vld [vmem:[#allocation17] sm:$0x10] }
 0x1a6   :  { %v616_v57 = vmax.f32 %v612_v54, 0.0 }
 0x1a8   :  { %v941_v49 = vpop.f32.mrf.mxu1 }
 0x1ab   :  { %v613_v55 = vpop.f32.mrf.mxu2 }
 0x1ac   :  { %v614_v56 = vadd.f32 %v2496_v53, %v613_v55  ;;  %v1968_v53 = vor.u32 %v2381_v52, %v1967_v51  ;;  %v2105_v51 = vor.u32 %v2398_v47, %v2102_v48  ;;  %v2408_v47 = vld [vmem:[%s3589_s17 + $0x10] sm:$0xff] }
 0x1ad   :  { %v2416_v48 = vld [vmem:[%s3589_s17 + $0x50] sm:$0xff] }
 0x1ae   :  { %v617_v58 = vmax.f32 %v614_v56, 0.0  ;;  %v820_v54 = vsel %vm818_vm5, %v1968_v53, 0 }
 0x1af   :  { %829 = vmatpush.bf16.msrb.mxu0 %v820_v54 }
 0x1b0   :  { %v618_v59 = vpack.c.bf16 %v617_v58, %v616_v57 }
 0x1b2   :  { %695 = vmatmul.bf16.vlgmr.msra.gmra.mxu3 %v618_v59 }
 0x1b3   :  { %v955_v52 = vpop.f32.mrf.mxu2 }
 0x235   :  { %v696_v8 = vpop.f32.mrf.mxu3 }
 0x236   :  { %v3365_v10 = vadd.f32 %v2497_v7, %v696_v8 }
 0x238   :  { %v721_v11 = vadd.f32 %v719_v9, %v3365_v10 }
 0x23a   :  { %v724_v13 = vmul.f32 %v723_v12, %v721_v11 }
 0x23c   :  { %v727_v14 = vsel %vm726_vm4, %v724_v13, -inf }
 0x23d   :  { %v698_v15 = vpop.f32.mrf.mxu3  ;;  %728 = vmax.xlane.f32.xlu0 %v727_v14 }
 0x23e   :  { %v3369_v17 = vadd.f32 %v2497_v7, %v698_v15 }
 0x240   :  { %v722_v18 = vadd.f32 %v720_v16, %v3369_v17  ;;  %v2389_v16 = vld [vmem:[#allocation20 + $0x38] sm:$0xff] }
 0x241   :  { %1037 = vmatpush.bf16.msrb.mxu3 %v2389_v16  ;;  %v2392_v16 = vld [vmem:[#allocation23 + $0x14] sm:$0xf] }
 0x242   :  { %v725_v19 = vmul.f32 %v723_v12, %v722_v18  ;;  %v2388_v18 = vld [vmem:[#allocation20 + $0x30] sm:$0xff] }
 0x244   :  { %v730_v20 = vsel %vm726_vm4, %v725_v19, -inf }
 0x245   :  { %731 = vmax.xlane.f32.xlu0 %v730_v20  ;;  %1038 = vmatpush.bf16.msrb.mxu3 %v2388_v18  ;;  %v2386_v20 = vld [vmem:[#allocation20 + $0x20] sm:$0xff] }
 0x2b0   :  { %v729_v30 = vpop.xlane.xlu0 %728 }
 0x2b1   :  { %v733_v31 = vsub.f32 %v724_v13, %v729_v30  ;;  %v2125_v30 = vor.u32 %v2405_v28, %v2124_v27  ;;  %v2070_v27 = vld [vmem:[#allocation23 + $0x8] sm:$0xf0] }
 0x2b3   :  { %v735_v32 = vmul.f32 1.442695, %v733_v31  ;;  %v2126_v31 = vld [vmem:[#allocation23 + $0x78] sm:$0xf0]  ;;  %1156 = vmatpush.bf16.msra.mxu0 %v2125_v30 }
 0x2b4   :  { %v2421_v30 = vld [vmem:[%s3589_s17 + $0x78] sm:$0xff] }
 0x2b5   :  { %2506 = vpow2.f32 %v735_v32  ;;  %v2116_v32 = vld [vmem:[#allocation23 + $0x60] sm:$0xf] }
 0x2b8   :  { %v732_v33 = vpop.xlane.xlu0 %731 }
 0x2b9   :  { %v734_v34 = vsub.f32 %v725_v19, %v732_v33  ;;  %v2387_v19 = vld [vmem:[#allocation20 + $0x28] sm:$0xff] }
 0x2ba   :  { %1039 = vmatpush.bf16.msrb.mxu3 %v2387_v19  ;;  %v2403_v33 = vld [vmem:[#allocation23 + $0x64] sm:$0xf0]  ;;  %v2078_v19 = vld [vmem:[#allocation23 + $0x18] sm:$0xf0] }
 0x2bb   :  { %v3373_v35 = vpop.eup %2506  ;;  %v737_v36 = vmul.f32 1.442695, %v734_v34  ;;  %v2129_v34 = vor.u32 %v2404_v29, %v2126_v31  ;;  %v2413_v29 = vld [vmem:[%s3589_s17 + $0x38] sm:$0xff]  ;;  %v2412_v31 = vld [vmem:[%s3589_s17 + $0x30] sm:$0xff] }
 0x2bc   :  { %v739_v37 = vsel %vm726_vm4, %v3373_v35, 0.0  ;;  %1322 = vmatpush.bf16.msra.mxu2 %v2413_v29 }
 0x2bd   :  { %2508 = vpow2.f32 %v737_v36  ;;  %740 = vadd.xlane.f32.xlu1 %v739_v37  ;;  %v2118_v36 = vld [vmem:[#allocation23 + $0x68] sm:$0xf0]  ;;  %v2117_v37 = vor.u32 %v2403_v33, %v2116_v32  ;;  %1170 = vmatpush.bf16.msra.mxu1 %v2129_v34 }
 0x2be   :  { %1040 = vmatpush.bf16.msrb.mxu3 %v2386_v20  ;;  %v2081_v20 = vor.u32 %v2392_v16, %v2078_v19  ;;  %v2420_v32 = vld [vmem:[%s3589_s17 + $0x70] sm:$0xff]  ;;  %v2411_v33 = vld [vmem:[%s3589_s17 + $0x28] sm:$0xff]  ;;  %v1361_v16 = vpop.permute.xlu2 %1360 }
 0x2bf   :  { %1157 = vmatpush.bf16.msra.mxu0 %v2117_v37  ;;  %v2419_v34 = vld [vmem:[%s3589_s17 + $0x68] sm:$0xff] }
 0x2c0   :  { %1323 = vmatpush.bf16.msra.mxu2 %v2412_v31  ;;  %v2422_v31 = vld [vmem:[#allocation26] sm:$0xff] }
 0x2c2   :  { %1041 = vmatpush.bf16.msrb.mxu3 %v2385_v21  ;;  %v2068_v21 = vld [vmem:[#allocation23] sm:$0xf] }
 0x2c3   :  { %v3377_v38 = vpop.eup %2508 }
 0x2c4   :  { %v742_v39 = vsel %vm726_vm4, %v3377_v38, 0.0  ;;  %1324 = vmatpush.bf16.msra.mxu2 %v2411_v33 }
 0x2c5   :  { %743 = vadd.xlane.f32.xlu1 %v742_v39  ;;  %v2108_v39 = vld [vmem:[#allocation23 + $0x50] sm:$0xf] }
 0x2c6   :  { %1042 = vmatpush.bf16.msrb.mxu3 %v2384_v22  ;;  %v2109_v43 = vor.u32 %v2401_v40, %v2108_v39  ;;  %v2391_v22 = vld [vmem:[#allocation23 + $0x4] sm:$0xf0] }
 0x2c8   :  { %1158 = vmatpush.bf16.msra.mxu0 %v2109_v43 }
 0x2ca   :  { %1043 = vmatpush.bf16.msrb.mxu3 %v2383_v23  ;;  %v2390_v23 = vld [vmem:[#allocation23 + $0x4] sm:$0xf] }
 0x2cb   :  { %v2073_v28 = vor.u32 %v2390_v23, %v2070_v27  ;;  %v1363_v23 = vpop.permute.xlu2 %1362  ;;  %v2200_v27 = vld [vmem:[#allocation26 + $0x8] sm:$0xf] }
 0x2cc   :  { %1159 = vmatpush.bf16.msra.mxu0 %v2101_v50  ;;  %v2415_v50 = vld [vmem:[%s3589_s17 + $0x48] sm:$0xff] }
 0x2ce   :  { %1044 = vmatpush.bf16.msrb.mxu3 %v2382_v24  ;;  %v2069_v24 = vor.u32 %v2391_v22, %v2068_v21 }
 0x2d2   :  { %1336 = vmatpush.bf16.msra.mxu3 %v2421_v30 }
 0x2d6   :  { %1337 = vmatpush.bf16.msra.mxu3 %v2420_v32 }
 0x2da   :  { %1338 = vmatpush.bf16.msra.mxu3 %v2419_v34 }
 0x330   :  { %v741_v55 = vpop.xlane.xlu1 %740 }
 0x331   :  { %2510 = vrcp.f32 %v741_v55  ;;  %v756_v63 = vand.u32 2147483648, %v741_v55  ;;  %vm750_vm7 = vweird.f32 %v741_v55  ;;  %v754_v0 = vand.u32 2147483647, %v741_v55 }
 0x333   :  { %v757_v5 = vor.u32 1.1754944e-38, %v756_v63  ;;  %vm755_vm10 = vcmp.eq.f32.partialorder %v754_v0, 8.507059e+37 }
 0x337   :  { %v2511_v56 = vpop.eup %2510 }
 0x338   :  { %v746_v57 = vmul.f32 %v2511_v56, %v741_v55  ;;  %v744_v58 = vpop.xlane.xlu1 %743  ;;  %vm751_vm6 = vweird.f32 %v2511_v56 }
 0x339   :  { %2512 = vrcp.f32 %v744_v58  ;;  %vm752_vm8 = vmor %vm750_vm7, %vm751_vm6  ;;  %v771_v25 = vand.u32 2147483648, %v744_v58  ;;  %v769_v3 = vand.u32 2147483647, %v744_v58  ;;  %vm765_vm11 = vweird.f32 %v744_v58 }
 0x33a   :  { %v747_v59 = vsub.f32 1.0, %v746_v57  ;;  %v943_v57 = vpop.f32.mrf.mxu1 }
 0x33b   :  { %v772_v7 = vor.u32 1.1754944e-38, %v771_v25  ;;  %vm770_vm13 = vcmp.eq.f32.partialorder %v769_v3, 8.507059e+37  ;;  %v2092_v25 = vld [vmem:[#allocation23 + $0x30] sm:$0xf]  ;;  %v2396_v3 = vld [vmem:[#allocation23 + $0x34] sm:$0xf] }
 0x33c   :  { %v748_v26 = vmul.f32 %v2511_v56, %v747_v59 }
 0x33e   :  { %v749_v61 = vadd.f32 %v2511_v56, %v748_v26  ;;  %v957_v26 = vpop.f32.mrf.mxu2 }
 0x33f   :  { %v2513_v60 = vpop.eup %2512 }
 0x340   :  { %v761_v62 = vmul.f32 %v2513_v60, %v744_v58  ;;  %vm766_vm9 = vweird.f32 %v2513_v60  ;;  %v753_v4 = vsel %vm752_vm8, %v2511_v56, %v749_v61  ;;  %v2498_v56 = vld [vmem:[#allocation18] ss:$0 sm:$0xff] }
 0x341   :  { %vm767_vm12 = vmor %vm765_vm11, %vm766_vm9  ;;  %v758_v8 = vsel %vm755_vm10, %v757_v5, %v753_v4  ;;  %v2094_v5 = vld [vmem:[#allocation23 + $0x38] sm:$0xf0] }
 0x342   :  { %v762_v1 = vsub.f32 1.0, %v761_v62  ;;  %v759_v12 = vmul.f32 %v3373_v35, %v758_v8  ;;  %v2402_v35 = vld [vmem:[#allocation23 + $0x64] sm:$0xf]  ;;  %v2395_v8 = vld [vmem:[#allocation23 + $0x24] sm:$0xf0] }
 0x344   :  { %v763_v2 = vmul.f32 %v2513_v60, %v762_v1 }
 0x346   :  { %v764_v6 = vadd.f32 %v2513_v60, %v763_v2  ;;  %v2397_v2 = vld [vmem:[#allocation23 + $0x34] sm:$0xf0] }
 0x347   :  { %v2093_v4 = vor.u32 %v2397_v2, %v2092_v25 }
 0x348   :  { %v768_v9 = vsel %vm767_vm12, %v2513_v60, %v764_v6  ;;  %v2097_v6 = vor.u32 %v2396_v3, %v2094_v5 }
 0x349   :  { %v773_v11 = vsel %vm770_vm13, %v772_v7, %v768_v9  ;;  %1160 = vmatpush.bf16.msra.mxu0 %v2093_v4  ;;  %v2084_v7 = vld [vmem:[#allocation23 + $0x20] sm:$0xf]  ;;  %v2394_v9 = vld [vmem:[#allocation23 + $0x24] sm:$0xf]  ;;  %v2500_v4 = vld [vmem:[%s3590_s18] ss:$0 sm:$0xff] }
 0x34a   :  { %v774_v13 = vmul.f32 %v3377_v38, %v773_v11  ;;  %v2121_v38 = vor.u32 %v2402_v35, %v2118_v36  ;;  %v2085_v11 = vor.u32 %v2395_v8, %v2084_v7  ;;  %v2410_v35 = vld [vmem:[%s3589_s17 + $0x20] sm:$0xff]  ;;  %s3046_s18 = smov 108  }
 0x34b   :  { %v2418_v36 = vld [vmem:[%s3589_s17 + $0x60] sm:$0xff]  ;;  %1325 = vmatpush.bf16.msra.mxu2 %v2410_v35 }
 0x34c   :  { %v2490_v14 = vpack.i.bf16 %v774_v13, %v759_v12  ;;  %v775_v15 = vpack.c.bf16 %v774_v13, %v759_v12  ;;  %1171 = vmatpush.bf16.msra.mxu1 %v2121_v38  ;;  %1339 = vmatpush.bf16.msra.mxu3 %v2418_v36  ;;  %v2499_v38 = vld [vmem:[#allocation21] ss:$0 sm:$0xff] }
 0x34d   :  { %1161 = vmatpush.bf16.msra.mxu0 %v2085_v11 }
 0x34e   :  { %2491 = vrot.lane.b32.xlu2 %v2490_v14, %s3044_s16  ;;  %1969 = vmatmul.msk.bf16.vlgmr.msrb.gmra.mxu0 %vm726_vm4, %v775_v15  ;;  %v2076_v14 = vld [vmem:[#allocation23 + $0x10] sm:$0xf]  ;;  %v2393_v15 = vld [vmem:[#allocation23 + $0x14] sm:$0xf0] }
 0x34f   :  { %v2077_v18 = vor.u32 %v2393_v15, %v2076_v14  ;;  %1326 = vmatpush.bf16.msra.mxu2 %v2409_v45 }
 0x350   :  { %1172 = vmatpush.bf16.msra.mxu1 %v2113_v44  ;;  %1340 = vmatpush.bf16.msra.mxu3 %v2417_v46 }
 0x351   :  { %1162 = vmatpush.bf16.msra.mxu0 %v2077_v18 }
 0x353   :  { %1327 = vmatpush.bf16.msra.mxu2 %v2408_v47 }
 0x354   :  { %1173 = vmatpush.bf16.msra.mxu1 %v2105_v51  ;;  %1341 = vmatpush.bf16.msra.mxu3 %v2416_v48  ;;  %v2406_v51 = vld [vmem:[%s3589_s17] sm:$0xff] }
 0x355   :  { %1163 = vmatpush.bf16.msra.mxu0 %v2069_v24 }
 0x356   :  { %1738 = vrot.lane.b32.xlu2 %v759_v12, %s3045_s3  ;;  %v2086_v12 = vld [vmem:[#allocation23 + $0x28] sm:$0xf0] }
 0x358   :  { %1174 = vmatpush.bf16.msra.mxu1 %v2097_v6  ;;  %1342 = vmatpush.bf16.msra.mxu3 %v2415_v50 }
 0x35e   :  { %1740 = vrot.lane.b32.xlu2 %v774_v13, %s3045_s3  ;;  %v2089_v13 = vor.u32 %v2394_v9, %v2086_v12 }
 0x360   :  { %1175 = vmatpush.bf16.msra.mxu1 %v2089_v13 }
 0x364   :  { %1176 = vmatpush.bf16.msra.mxu1 %v2081_v20 }
 0x368   :  { %1177 = vmatpush.bf16.msra.mxu1 %v2073_v28  ;;  %v2423_v28 = vld [vmem:[#allocation26 + $0x8] sm:$0x70] }
 0x369   :  { %v2201_v29 = vor.u32 %v2423_v28, %v2200_v27  ;;  %v2452_v28 = vld [vmem:[%s3597_s25 + $0x64] sm:$0xf] }
 0x36b   :  { %v1415_v30 = vsel %vm1413_vm14, %v2201_v29, 0  ;;  %v2319_v29 = vld [vmem:[%s3597_s25 + $0x68] sm:$0xf0] }
 0x36c   :  { %1423 = vmatpush.bf16.msrb.mxu0 %v1415_v30 }
 0x370   :  { %1424 = vmatpush.bf16.msrb.mxu0 %v2422_v31  ;;  %v2322_v31 = vor.u32 %v2452_v28, %v2319_v29 }
 0x3a8   :  { %v2492_v34 = vpop.permute.xlu2 %2491 }
 0x3a9   :  { %v2494_v36 = vunpack.i.h.bf16 %v2492_v34 }
 0x3cb   :  { %v831_v53 = vpop.f32.mrf.mxu0 }
 0x3cc   :  { %v942_v54 = vadd.f32 %v941_v49, %v831_v53  ;;  %v2407_v49 = vld [vmem:[%s3589_s17 + $0x8] sm:$0xff]  ;;  %v1070_v53 = vld [vmem:[#allocation24] sm:$0x3] }
 0x3cd   :  { %1328 = vmatpush.bf16.msra.mxu2 %v2407_v49 }
 0x3ce   :  { %v956_v55 = vadd.f32 %v955_v52, %v942_v54  ;;  %v2414_v52 = vld [vmem:[%s3589_s17 + $0x40] sm:$0xff] }
 0x3cf   :  { %1343 = vmatpush.bf16.msra.mxu3 %v2414_v52  ;;  %v2430_v52 = vld [vmem:[#allocation27 + $0x30] sm:$0xff] }
 0x3d0   :  { %v964_v60 = vadd.f32 %v2498_v56, %v956_v55 }
 0x3d1   :  { %1329 = vmatpush.bf16.msra.mxu2 %v2406_v51 }
 0x3d2   :  { %v966_v63 = vmax.f32 %v964_v60, 0.0 }
 0x3d3   :  { %v833_v58 = vpop.f32.mrf.mxu0 }
 0x3d4   :  { %v944_v59 = vadd.f32 %v943_v57, %v833_v58  ;;  %v1073_v57 = vperm.slane %v1070_v53, 1 }
 0x3d6   :  { %v958_v61 = vadd.f32 %v957_v26, %v944_v59 }
 0x3d8   :  { %v965_v62 = vadd.f32 %v2498_v56, %v958_v61  ;;  %v1072_v56 = vperm.slane %v1070_v53, 0 }
 0x3da   :  { %v967_v0 = vmax.f32 %v965_v62, 0.0 }
 0x3dc   :  { %v968_v1 = vpack.c.bf16 %v967_v0, %v966_v63 }
 0x3de   :  { %1045 = vmatmul.bf16.vlgmr.msrb.gmra.mxu3 %v968_v1 }
 0x461   :  { %v1046_v37 = vpop.f32.mrf.mxu3 }
 0x462   :  { %v1047_v39 = vadd.f32 %v2499_v38, %v1046_v37  ;;  %v2493_v37 = vunpack.i.l.bf16 %v2492_v34  ;;  %v2450_v34 = vld [vmem:[%s3597_s25 + $0x54] sm:$0xf] }
 0x464   :  { %v1051_v42 = vmax.f32 %v1047_v39, 0.0 }
 0x469   :  { %v1048_v40 = vpop.f32.mrf.mxu3 }
 0x46a   :  { %v1049_v41 = vadd.f32 %v2499_v38, %v1048_v40 }
 0x46c   :  { %v1052_v43 = vmax.f32 %v1049_v41, 0.0 }
 0x46e   :  { %v1053_v44 = vpack.c.bf16 %v1052_v43, %v1051_v42  ;;  %v2431_v42 = vld [vmem:[#allocation27 + $0x38] sm:$0xff]  ;;  %v1739_v43 = vpop.permute.xlu2 %1738 }
 0x46f   :  { %v1768_v48 = vsel %vm726_vm4, %v3365_v10, %v1739_v43  ;;  %v2426_v10 = vld [vmem:[#allocation27 + $0x10] sm:$0xff] }
 0x470   :  { %1164 = vmatmul.bf16.vlgmr.msra.gmra.mxu0 %v1053_v44  ;;  %1178 = vmatmul.bf16.vlgmr.msra.gmra.mxu1 %v1053_v44 }
 0x471   :  { %1502 = vmatpush.bf16.msra.mxu0 %v2431_v42 }
 0x475   :  { %1503 = vmatpush.bf16.msra.mxu0 %v2430_v52  ;;  %v2293_v52 = vld [vmem:[%s3597_s25 + $0x30] sm:$0xf] }
 0x476   :  { %v1741_v44 = vpop.permute.xlu2 %1740 }
 0x4ed   :  { %v1165_v54 = vpop.f32.mrf.mxu0  ;;  %v1179_v55 = vpop.f32.mrf.mxu1 }
 0x4ee   :  { %v1166_v58 = vadd.f32 %v1165_v54, %v1072_v56  ;;  %v1180_v59 = vadd.f32 %v1179_v55, %v1073_v57  ;;  %v2429_v55 = vld [vmem:[#allocation27 + $0x28] sm:$0xff] }
 0x4ef   :  { %1504 = vmatpush.bf16.msra.mxu0 %v2429_v55 }
 0x4f0   :  { %v1184_v63 = vmax.f32 %v1166_v58, 0.0  ;;  %v1185_v0 = vmax.f32 %v1180_v59, 0.0  ;;  %v2425_v58 = vld [vmem:[#allocation27 + $0x8] sm:$0xff]  ;;  %v2424_v59 = vld [vmem:[#allocation27] sm:$0xff] }
 0x4f5   :  { %v1167_v26 = vpop.f32.mrf.mxu0  ;;  %v1181_v60 = vpop.f32.mrf.mxu1 }
 0x4f6   :  { %v1168_v61 = vadd.f32 %v1167_v26, %v1072_v56  ;;  %v1182_v62 = vadd.f32 %v1181_v60, %v1073_v57  ;;  %v2428_v56 = vld [vmem:[#allocation27 + $0x20] sm:$0xff]  ;;  %v2427_v57 = vld [vmem:[#allocation27 + $0x18] sm:$0xff] }
 0x4f7   :  { %1505 = vmatpush.bf16.msra.mxu0 %v2428_v56  ;;  %v2439_v60 = vld [vmem:[#allocation30 + $0x38] sm:$0xff]  ;;  %v2295_v56 = vld [vmem:[%s3597_s25 + $0x38] sm:$0xf0] }
 0x4f8   :  { %v1186_v1 = vmax.f32 %v1168_v61, 0.0  ;;  %v1187_v25 = vmax.f32 %v1182_v62, 0.0  ;;  %v1769_v61 = vsel %vm726_vm4, %v3369_v17, %v1741_v44  ;;  %1587 = vmatpush.bf16.msrb.mxu1 %v2439_v60  ;;  %v2501_v17 = vld [vmem:[%s3592_s20] ss:$0 sm:$0xff]  ;;  %v2287_v60 = vld [vmem:[%s3597_s25 + $0x28] sm:$0xf0] }
 0x4fa   :  { %v1188_v2 = vpack.c.bf16 %v1186_v1, %v1184_v63  ;;  %v1189_v3 = vpack.c.bf16 %v1187_v25, %v1185_v0  ;;  %v2438_v63 = vld [vmem:[#allocation30 + $0x30] sm:$0xff] }
 0x4fb   :  { %1506 = vmatpush.bf16.msra.mxu0 %v2427_v57 }
 0x4fc   :  { %1330 = vmatmul.bf16.vlgmr.msra.gmra.mxu2 %v1188_v2  ;;  %1344 = vmatmul.bf16.vlgmr.msra.gmra.mxu3 %v1189_v3  ;;  %v2437_v3 = vld [vmem:[#allocation30 + $0x28] sm:$0xff] }
 0x4fd   :  { %1588 = vmatpush.bf16.msrb.mxu1 %v2438_v63  ;;  %v2443_v63 = vld [vmem:[%s3597_s25 + $0x14] sm:$0xf0] }
 0x4ff   :  { %1507 = vmatpush.bf16.msra.mxu0 %v2426_v10  ;;  %v2285_v10 = vld [vmem:[%s3597_s25 + $0x20] sm:$0xf] }
 0x501   :  { %1589 = vmatpush.bf16.msrb.mxu1 %v2437_v3  ;;  %v2269_v3 = vld [vmem:[%s3597_s25] sm:$0xf] }
 0x503   :  { %1508 = vmatpush.bf16.msra.mxu0 %v2425_v58  ;;  %v2445_v58 = vld [vmem:[%s3597_s25 + $0x24] sm:$0xf0] }
 0x507   :  { %1509 = vmatpush.bf16.msra.mxu0 %v2424_v59  ;;  %v2444_v59 = vld [vmem:[%s3597_s25 + $0x24] sm:$0xf] }
 0x57f   :  { %v1331_v5 = vpop.f32.mrf.mxu2  ;;  %v1345_v6 = vpop.f32.mrf.mxu3 }
 0x580   :  { %v1332_v7 = vadd.f32 %v2500_v4, %v1331_v5 }
 0x582   :  { %v1346_v8 = vadd.f32 %v1345_v6, %v1332_v7 }
 0x584   :  { %v1350_v9 = vmul.f32 0.5, %v1346_v8 }
 0x586   :  { %v1352_v11 = vmul.f32 1.442695, %v1350_v9 }
 0x587   :  { %v1333_v12 = vpop.f32.mrf.mxu2  ;;  %v1347_v14 = vpop.f32.mrf.mxu3 }
 0x588   :  { %2514 = vpow2.f32 %v1352_v11  ;;  %v1334_v13 = vadd.f32 %v2500_v4, %v1333_v12  ;;  %v2436_v4 = vld [vmem:[#allocation30 + $0x20] sm:$0xff] }
 0x589   :  { %1590 = vmatpush.bf16.msrb.mxu1 %v2436_v4  ;;  %v2441_v4 = vld [vmem:[%s3597_s25 + $0x4] sm:$0xf0] }
 0x58a   :  { %v1348_v15 = vadd.f32 %v1347_v14, %v1334_v13  ;;  %v2435_v13 = vld [vmem:[#allocation30 + $0x18] sm:$0xff]  ;;  %v2434_v14 = vld [vmem:[#allocation30 + $0x10] sm:$0xff] }
 0x58c   :  { %v1351_v18 = vmul.f32 0.5, %v1348_v15  ;;  %1748 = vrot.lane.b32.xlu2 %v1348_v15, %s3044_s16 }
 0x58d   :  { %1591 = vmatpush.bf16.msrb.mxu1 %v2435_v13 }
 0x58e   :  { %v2515_v19 = vpop.eup %2514  ;;  %v1354_v20 = vmul.f32 1.442695, %v1351_v18  ;;  %v2325_v18 = vld [vmem:[%s3597_s25 + $0x70] sm:$0xf] }
 0x58f   :  { %v1366_v21 = vmul.f32 %v2515_v19, %v1361_v16  ;;  %v2432_v16 = vld [vmem:[#allocation30] sm:$0xff] }
 0x590   :  { %2516 = vpow2.f32 %v1354_v20  ;;  %v2454_v20 = vld [vmem:[%s3597_s25 + $0x74] sm:$0xf] }
 0x591   :  { %1370 = vrot.lane.b32.xlu0 %v1366_v21, %s3046_s18  ;;  %1592 = vmatpush.bf16.msrb.mxu1 %v2434_v14 }
 0x596   :  { %v2517_v22 = vpop.eup %2516 }
 0x597   :  { %v1367_v24 = vmul.f32 %v2517_v22, %v1363_v23  ;;  %v2317_v23 = vld [vmem:[%s3597_s25 + $0x60] sm:$0xf] }
 0x599   :  { %1372 = vrot.lane.b32.xlu1 %v1367_v24, %s3046_s18  ;;  %1746 = vrot.lane.b32.xlu0 %v1346_v8, %s3044_s16  ;;  %v2453_v24 = vld [vmem:[%s3597_s25 + $0x64] sm:$0xf0]  ;;  %s3640_s18 = sld [smem:[#allocation61_spill]] }
 0x59a   :  { %v2318_v30 = vor.u32 %v2453_v24, %v2317_v23 }
 0x5a1   :  { %1754 = vrot.lane.b32.xlu1 %v2515_v19, %s3044_s16  ;;  %1756 = vrot.lane.b32.xlu0 %v2517_v22, %s3044_s16  ;;  %v2455_v19 = vld [vmem:[%s3597_s25 + $0x74] sm:$0xf0]  ;;  %v2327_v22 = vld [vmem:[%s3597_s25 + $0x78] sm:$0xf0] }
 0x5a2   :  { %v2326_v21 = vor.u32 %v2455_v19, %v2325_v18  ;;  %v2330_v27 = vor.u32 %v2454_v20, %v2327_v22  ;;  %v1620_v18 = vld [vmem:[%s3639_s4] sm:$0x3] }
 0x5a3   :  { %v1622_v19 = vperm.slane %v1620_v18, 0  ;;  %v1623_v20 = vperm.slane %v1620_v18, 1 }
 0x5a4   :  { %1706 = vmatpush.bf16.msrb.mxu2 %v2326_v21  ;;  %1720 = vmatpush.bf16.msrb.mxu3 %v2330_v27 }
 0x5a8   :  { %1707 = vmatpush.bf16.msrb.mxu2 %v2318_v30  ;;  %1721 = vmatpush.bf16.msrb.mxu3 %v2322_v31 }
 0x5e6   :  { %v1749_v45 = vpop.permute.xlu2 %1748 }
 0x5e7   :  { %v1771_v62 = vsel %vm1386_vm15, %v1769_v61, %v1749_v45  ;;  %v2502_v45 = vld [vmem:[#allocation29] ss:$0 sm:$0xff]  ;;  %v2290_v61 = vor.u32 %v2444_v59, %v2287_v60 }
 0x603   :  { %v1371_v32 = vpop.permute.xlu0 %1370 }
 0x604   :  { %v1376_v33 = vadd.f32 %v1371_v32, %v1346_v8  ;;  %v2309_v32 = vld [vmem:[%s3597_s25 + $0x50] sm:$0xf] }
 0x606   :  { %1762 = vrot.lane.b32.xlu2 %v1376_v33, %s3047_s0  ;;  %v1387_v39 = vsel %vm1386_vm15, %v1376_v33, %v2493_v37  ;;  %v2451_v33 = vld [vmem:[%s3597_s25 + $0x54] sm:$0xf0] }
 0x60b   :  { %v1373_v35 = vpop.permute.xlu1 %1372  ;;  %v1747_v46 = vpop.permute.xlu0 %1746 }
 0x60c   :  { %v1377_v38 = vadd.f32 %v1373_v35, %v1348_v15  ;;  %v1770_v49 = vsel %vm1386_vm15, %v1768_v48, %v1747_v46  ;;  %v2433_v15 = vld [vmem:[#allocation30 + $0x8] sm:$0xff] }
 0x60d   :  { %1593 = vmatpush.bf16.msrb.mxu1 %v2433_v15  ;;  %v2311_v35 = vld [vmem:[%s3597_s25 + $0x58] sm:$0xf0] }
 0x60e   :  { %v1388_v40 = vsel %vm1386_vm15, %v1377_v38, %v2494_v36  ;;  %1764 = vrot.lane.b32.xlu1 %v1377_v38, %s3047_s0  ;;  %v2310_v36 = vor.u32 %v2451_v33, %v2309_v32  ;;  %v2314_v37 = vor.u32 %v2450_v34, %v2311_v35  ;;  %v2301_v38 = vld [vmem:[%s3597_s25 + $0x40] sm:$0xf]  ;;  %s1789_s0 = sshll.u32 %s3640_s18, 4  ;;  %s1790_s0 = int_to_ptr.hbm [resolvable:$true] %s1789_s0 }
 0x60f   :  { %v1389_v41 = vpack.c.bf16 %v1388_v40, %v1387_v39  ;;  %v2449_v39 = vld [vmem:[%s3597_s25 + $0x44] sm:$0xf0]  ;;  %v2448_v40 = vld [vmem:[%s3597_s25 + $0x44] sm:$0xf] }
 0x610   :  { %1708 = vmatpush.bf16.msrb.mxu2 %v2310_v36  ;;  %v2302_v42 = vor.u32 %v2449_v39, %v2301_v38  ;;  %1722 = vmatpush.bf16.msrb.mxu3 %v2314_v37 }
 0x611   :  { %2202 = vmatmul.msk.bf16.vlgmr.msrb.gmra.mxu0 %vm1409_vm0, %v1389_v41  ;;  %1594 = vmatpush.bf16.msrb.mxu1 %v2432_v16  ;;  %v2303_v41 = vld [vmem:[%s3597_s25 + $0x48] sm:$0xf0] }
 0x612   :  { %v2306_v43 = vor.u32 %v2448_v40, %v2303_v41 }
 0x613   :  { %v1755_v47 = vpop.permute.xlu1 %1754  ;;  %v1757_v26 = vpop.permute.xlu0 %1756 }
 0x614   :  { %v1773_v50 = vsel %vm1772_vm1, %v1770_v49, %v1755_v47  ;;  %v1774_v0 = vsel %vm1772_vm1, %v1771_v62, %v1757_v26  ;;  %1709 = vmatpush.bf16.msrb.mxu2 %v2302_v42  ;;  %1723 = vmatpush.bf16.msrb.mxu3 %v2306_v43  ;;  %v2286_v26 = vor.u32 %v2445_v58, %v2285_v10  ;;  %v2277_v62 = vld [vmem:[%s3597_s25 + $0x10] sm:$0xf] }
 0x660   :  { %v1763_v51 = vpop.permute.xlu2 %1762 }
 0x661   :  { %v1776_v53 = vsel %vm1775_vm2, %v1773_v50, %v1763_v51 }
 0x662   :  { %v1779_v54 = vsel %vm1778_vm3, %v1776_v53, 0.0  ;;  %v2447_v53 = vld [vmem:[%s3597_s25 + $0x34] sm:$0xf0] }
 0x663   :  { %1781 = vst [vmem:[#allocation33] sm:$0xff] %v1779_v54  ;;  %v2446_v54 = vld [vmem:[%s3597_s25 + $0x34] sm:$0xf]  ;;  %v2294_v55 = vor.u32 %v2447_v53, %v2293_v52 }
 0x664   :  { %v2298_v57 = vor.u32 %v2446_v54, %v2295_v56 }
 0x665   :  { %1710 = vmatpush.bf16.msrb.mxu2 %v2294_v55 }
 0x666   :  { %1724 = vmatpush.bf16.msrb.mxu3 %v2298_v57 }
 0x669   :  { %1711 = vmatpush.bf16.msrb.mxu2 %v2286_v26 }
 0x66a   :  { %1725 = vmatpush.bf16.msrb.mxu3 %v2290_v61 }
 0x680   :  { %v1765_v1 = vpop.permute.xlu1 %1764 }
 0x681   :  { %v1777_v25 = vsel %vm1775_vm2, %v1774_v0, %v1765_v1  ;;  %v2442_v0 = vld [vmem:[%s3597_s25 + $0x14] sm:$0xf]  ;;  %v2278_v1 = vor.u32 %v2443_v63, %v2277_v62 }
 0x682   :  { %v1780_v2 = vsel %vm1778_vm3, %v1777_v25, 0.0  ;;  %v2279_v25 = vld [vmem:[%s3597_s25 + $0x18] sm:$0xf0] }
 0x683   :  { %1782 = vst [vmem:[#allocation33 + $0x8] sm:$0xff] %v1780_v2  ;;  %v2282_v2 = vor.u32 %v2442_v0, %v2279_v25  ;;  %1712 = vmatpush.bf16.msrb.mxu2 %v2278_v1 }
 0x684   :  { %1808 = dma.vmem_to_hbm [thread:$0]  %s1801_s27, 256, %s1803_s21, [#allocation34], %s3632_s2, %s3632_s2, %s3631_s29  }
 0x685   :  { %1726 = vmatpush.bf16.msrb.mxu3 %v2282_v2  ;;  %s3050_s29 = smov 256   ;;  %s3051_s2 = smov 16  }
 0x68e   :  { %v1426_v5 = vpop.f32.mrf.mxu0 }
 0x68f   :  { %v1427_v6 = vadd.f32 %v2501_v17, %v1426_v5  ;;  %v2440_v5 = vld [vmem:[%s3597_s25 + $0x4] sm:$0xf] }
 0x691   :  { %v1431_v9 = vmax.f32 %v1427_v6, 0.0  ;;  %v2271_v6 = vld [vmem:[%s3597_s25 + $0x8] sm:$0xf0] }
 0x696   :  { %v1428_v7 = vpop.f32.mrf.mxu0 }
 0x697   :  { %v1429_v8 = vadd.f32 %v2501_v17, %v1428_v7  ;;  %v2270_v17 = vor.u32 %v2441_v4, %v2269_v3  ;;  %v2274_v7 = vor.u32 %v2440_v5, %v2271_v6 }
 0x699   :  { %v1432_v11 = vmax.f32 %v1429_v8, 0.0  ;;  %1713 = vmatpush.bf16.msrb.mxu2 %v2270_v17  ;;  %1727 = vmatpush.bf16.msrb.mxu3 %v2274_v7 }
 0x69b   :  { %v1433_v12 = vpack.c.bf16 %v1432_v11, %v1431_v9  ;;  %v2503_v9 = vld [vmem:[%s3596_s24] ss:$0 sm:$0xff] }
 0x69d   :  { %1510 = vmatmul.bf16.vlgmr.msra.gmra.mxu0 %v1433_v12 }
 0x71a   :  { %v1511_v44 = vpop.f32.mrf.mxu0 }
 0x71b   :  { %v1512_v46 = vadd.f32 %v2502_v45, %v1511_v44 }
 0x71d   :  { %v1516_v49 = vmax.f32 %v1512_v46, 0.0 }
 0x722   :  { %v1513_v47 = vpop.f32.mrf.mxu0 }
 0x723   :  { %v1514_v48 = vadd.f32 %v2502_v45, %v1513_v47 }
 0x725   :  { %v1517_v50 = vmax.f32 %v1514_v48, 0.0 }
 0x727   :  { %v1518_v51 = vpack.c.bf16 %v1517_v50, %v1516_v49 }
 0x729   :  { %1595 = vmatmul.bf16.vlgmr.msrb.gmra.mxu1 %v1518_v51 }
 0x7a6   :  { %v1596_v8 = vpop.f32.mrf.mxu1 }
 0x7a7   :  { %v1597_v11 = vadd.f32 %v2503_v9, %v1596_v8 }
 0x7a9   :  { %v1601_v14 = vmax.f32 %v1597_v11, 0.0 }
 0x7ae   :  { %v1598_v12 = vpop.f32.mrf.mxu1 }
 0x7af   :  { %v1599_v13 = vadd.f32 %v2503_v9, %v1598_v12 }
 0x7b1   :  { %v1602_v15 = vmax.f32 %v1599_v13, 0.0 }
 0x7b3   :  { %v1603_v16 = vpack.c.bf16 %v1602_v15, %v1601_v14 }
 0x7b5   :  { %1714 = vmatmul.bf16.vlgmr.msrb.gmra.mxu2 %v1603_v16  ;;  %1728 = vmatmul.bf16.vlgmr.msrb.gmra.mxu3 %v1603_v16 }
 0x838   :  { %v1715_v21 = vpop.f32.mrf.mxu2  ;;  %v1729_v22 = vpop.f32.mrf.mxu3 }
 0x839   :  { %v1716_v23 = vadd.f32 %v1715_v21, %v1622_v19  ;;  %v1730_v24 = vadd.f32 %v1729_v22, %v1623_v20 }
 0x83b   :  { %1734 = vst [vmem:[#allocation32] sm:$0xff] %v1716_v23 }
 0x83c   :  { %1735 = vst [vmem:[#allocation32 + $0x8] sm:$0xff] %v1730_v24 }
 0x840   :  { %v1717_v27 = vpop.f32.mrf.mxu2  ;;  %v1731_v28 = vpop.f32.mrf.mxu3 }
 0x841   :  { %v1718_v29 = vadd.f32 %v1717_v27, %v1622_v19  ;;  %v1732_v30 = vadd.f32 %v1731_v28, %v1623_v20 }
 0x843   :  { %1736 = vst [vmem:[#allocation32 + $0x10] sm:$0xff] %v1718_v29 }
 0x844   :  { %1737 = vst [vmem:[#allocation32 + $0x18] sm:$0xff] %v1732_v30 }
 0x845   :  { %1795 = dma.vmem_to_hbm [thread:$0]  %s1788_s7, 512, %s1790_s0, [#allocation5], %s3050_s29, %s3050_s29, %s3051_s2  }
 0x846   :  { %3018 = dma.done.wait [#allocation5], 512  }
 0x847   :  { %3019 = vsyncadd [#allocation5], 4294966784 }
 0x848   :  { %3020 = dma.done.wait [#allocation34], 256  }
 0x849   :  { %3021 = vsyncadd [#allocation34], 4294967040 }
 0x84a   :  { %1817 = vsyncpa [#allocation4], 1 }
 0x84b   :  { %1818 = vsyncpa [#allocation7], 1 }
 0x84c   :  { %1819 = vsyncpa [#allocation10], 1 }
 0x84d   :  { %1820 = vsyncpa [#allocation13], 1 }
 0x84e   :  { %1821 = vsyncpa [#allocation16], 1 }
 0x84f   :  { %1822 = vsyncpa [#allocation19], 1 }
 0x850   :  { %1823 = vsyncpa [#allocation22], 1 }
 0x851   :  { %1824 = vsyncpa [#allocation25], 1 }
 0x852   :  { %1825 = vsyncpa [#allocation28], 1 }
 0x853   :  { %1826 = vsyncpa [#allocation31], 1 }
 0x854   :  { %1827 = vsyncpa [#allocation5], 1 }
 0x855   :  { %1828 = vsyncpa [#allocation34], 1 }

</bundles_post_ra>
